<compile_context>
chip_gen: v5e
topology: v5e:2x2
jax: 0.10.0
libtpu: 0.0.40
codegen_flags: <defaults>
</compile_context>

<pallas_src>
import functools

import numpy as np
import jax
import jax.numpy as jnp
from jax import lax
from jax.experimental import pallas as pl
from jax.experimental.pallas import tpu as pltpu


# ----------------------------------------------------------------------------
# Fused kernel: all K flows for one batch tile, parity/permutation already
# folded into the (masked, full-width) weights.  Per flow k:
#   h      = tanh(a @ W1_full_k + b1_k)
#   s,t    = h @ Ws_full_k + bs_k ,  h @ Wt_full_k + bt_k     (zero on untouched cols)
#   a      = exp(s) * a + t                                   (elementwise, in place)
#   logdet += sum(s, axis=1)
# Single lane-dense store of [a_1 | ... | a_K | logdet] at the end.
# ----------------------------------------------------------------------------
def _fused_flow_kernel(x_ref, w1_ref, b1_ref, ws_ref, bs_ref, wt_ref, bt_ref,
                       out_ref, *, k_flows):
    a = x_ref[...]                                   # (tile_m, D) f32
    tile_m, d = a.shape
    ld = jnp.zeros((tile_m, 1), jnp.float32)
    pieces = []
    for k in range(k_flows):                         # K is small & static -> unrolled
        h = jnp.tanh(
            jnp.dot(a, w1_ref[k], preferred_element_type=jnp.float32) + b1_ref[k])
        s = jnp.dot(h, ws_ref[k], preferred_element_type=jnp.float32) + bs_ref[k]
        t = jnp.dot(h, wt_ref[k], preferred_element_type=jnp.float32) + bt_ref[k]
        a = jnp.exp(s) * a + t                       # identity on untouched columns
        ld = ld + jnp.sum(s, axis=1, keepdims=True)
        pieces.append(a)                             # stays resident in vregs/VMEM
    pieces.append(jnp.broadcast_to(ld, (tile_m, d))) # fold log_det into the slab
    out_ref[...] = jnp.concatenate(pieces, axis=1)   # ONE lane-dense store per tile


# ----------------------------------------------------------------------------
# Static layout/parameter folding (wrapper side, no device compute).
# phi: X_k column i derives from X_{k-1} column phi(i) = 2i (i<half) or
#      2(i-half)+1 (i>=half)  -- same for both parities.
# We keep the kernel activation A_k = X_k[:, sigma_k] with sigma_0 = identity and
# sigma_k = phi^{-1}(sigma_{k-1}), so A_k col j always derives from A_{k-1} col j
# and the kernel update is purely elementwise.
# ----------------------------------------------------------------------------
def _prepare_fused_params(flow_params, dim):
    half = dim // 2
    phi_inv = np.empty((dim,), np.int64)
    phi_inv[0::2] = np.arange(half)           # even column c -> c // 2
    phi_inv[1::2] = half + np.arange(half)    # odd  column c -> half + c // 2

    sigma = np.arange(dim)                    # layout of the kernel input (identity)
    w1s, b1s, wss, bss, wts, bts = [], [], [], [], [], []
    gather_cols = []

    for k, (parity, (w1, b1, ws, bs, wt, bt)) in enumerate(flow_params):
        w1 = jnp.asarray(w1, jnp.float32)                       # (half, hidden)
        b1 = jnp.reshape(jnp.asarray(b1, jnp.float32), (1, -1)) # (1, hidden)
        ws = jnp.asarray(ws, jnp.float32)                       # (hidden, half)
        bs = jnp.reshape(jnp.asarray(bs, jnp.float32), (-1,))   # (half,)
        wt = jnp.asarray(wt, jnp.float32)
        bt = jnp.reshape(jnp.asarray(bt, jnp.float32), (-1,))

        # First layer: W1 row r multiplies X_{k-1} column (2r + parity).
        cond_mask = (sigma % 2) == int(parity)          # A columns feeding the MLP
        rows = sigma // 2
        w1_full = jnp.where(cond_mask[:, None], w1[rows, :], 0.0)   # (dim, hidden)

        # Output layout of this flow; which A columns get transformed, and which
        # s/t head applies to them.
        sigma_next = phi_inv[sigma]
        if parity:
            t_mask = sigma_next < half                   # parity 1: first half of X_k
            heads = np.where(t_mask, sigma_next, 0)
        else:
            t_mask = sigma_next >= half                  # parity 0: second half of X_k
            heads = np.where(t_mask, sigma_next - half, 0)
        ws_full = jnp.where(t_mask[None, :], ws[:, heads], 0.0)     # (hidden, dim)
        wt_full = jnp.where(t_mask[None, :], wt[:, heads], 0.0)
        bs_full = jnp.where(t_mask, bs[heads], 0.0)[None, :]        # (1, dim)
        bt_full = jnp.where(t_mask, bt[heads], 0.0)[None, :]

        w1s.append(w1_full); b1s.append(b1)
        wss.append(ws_full); bss.append(bs_full)
        wts.append(wt_full); bts.append(bt_full)

        # X_k[:, i] = A_k[:, inv_sigma[i]]  (wrapper-side un-permutation)
        inv_sigma = np.argsort(sigma_next)
        gather_cols.append(k * dim + inv_sigma)
        sigma = sigma_next

    gather_idx = jnp.asarray(np.concatenate(gather_cols), jnp.int32)
    return (jnp.stack(w1s), jnp.stack(b1s), jnp.stack(wss), jnp.stack(bss),
            jnp.stack(wts), jnp.stack(bts), gather_idx)


# ----------------------------------------------------------------------------
# Tile selection: biggest VMEM-budgeted tile, but keep >= 2 grid steps when the
# whole batch would otherwise be a single step (so the "parallel" batch axis can
# shard across both TensorCores on megacore parts, v7x).
# ----------------------------------------------------------------------------
def _choose_tile_m(m, d, k_flows):
    # Per-row cost: x tile + (K+1)*d output slab, double-buffered.
    row_bytes = 4 * d * (k_flows + 2) * 2
    cap = max(8, min(4096, (24 * 2 ** 20) // row_bytes))
    cap = (cap // 8) * 8
    if m <= cap and (m // 2) % 8 == 0:
        return m // 2                          # 2 fat tiles -> both TCs busy on v7x
    best, t = 8, 8
    while t <= min(m, cap):                    # largest 8-aligned divisor of m <= cap
        if m % t == 0:
            best = t
        t += 8
    return best


# ----------------------------------------------------------------------------
# NormalizingFlow.forward equivalent.
# ----------------------------------------------------------------------------
def normalizing_flow_forward(x, flow_params, *, tile_m=None, min_kernel_rows=64):
    """x: (m, D) float32. flow_params: list of (parity, (W1,b1,Ws,bs,Wt,bt)).

    Returns (zs, log_det): zs = [x, z_1, ..., z_K], log_det shape (m,).
    """
    x = jnp.asarray(x, jnp.float32)
    m, d = x.shape
    assert d % 2 == 0, "AffineHalfFlow requires an even feature dimension"
    k_flows = len(flow_params)
    if k_flows == 0:
        return [x], jnp.zeros((m,), jnp.float32)

    # Tiny / ragged batches: kernel launch + pipeline overhead dominates and a
    # partial last tile would need masking -> use the XLA-fused reference path.
    if m < min_kernel_rows or m % 8 != 0:
        return _reference_forward(x, flow_params)

    hidden = flow_params[0][1][0].shape[1]
    assert all(p[1][0].shape[1] == hidden for p in flow_params)

    if tile_m is None:
        tile_m = _choose_tile_m(m, d, k_flows)
    assert m % tile_m == 0, "batch size must be divisible by tile_m"
    assert tile_m % 8 == 0 or tile_m == m, "tile_m must be sublane (8) aligned"

    w1, b1, ws, bs, wt, bt, gather_idx = _prepare_fused_params(flow_params, d)

    out_w = (k_flows + 1) * d                  # K activations + log_det group
    step_bytes = 4 * (tile_m * d + tile_m * out_w
                      + k_flows * (d * hidden + hidden + 2 * hidden * d + 2 * d))
    # >= default scoped limit, generous headroom, capped under v7x's 64 MiB physical.
    vmem_limit = int(min(48 * 2 ** 20, max(32 * 2 ** 20, 4 * step_bytes)))

    kernel = functools.partial(_fused_flow_kernel, k_flows=k_flows)
    grid = (m // tile_m,)

    # TODO(synk): at large D/hidden, single-buffer the grid-invariant weight
    # stacks (pipeline_mode=pl.Buffered(1) or a one-shot manual copy) so they
    # are not double-buffered in VMEM; negligible at these sizes.
    slab = pl.pallas_call(
        kernel,
        out_shape=jax.ShapeDtypeStruct((m, out_w), jnp.float32),
        grid_spec=pltpu.PrefetchScalarGridSpec(
            num_scalar_prefetch=0,
            grid=grid,
            in_specs=[
                pl.BlockSpec((tile_m, d), lambda i: (i, 0)),              # activations
                pl.BlockSpec((k_flows, d, hidden), lambda i: (0, 0, 0)),  # W1_full
                pl.BlockSpec((k_flows, 1, hidden), lambda i: (0, 0, 0)),  # b1
                pl.BlockSpec((k_flows, hidden, d), lambda i: (0, 0, 0)),  # Ws_full
                pl.BlockSpec((k_flows, 1, d), lambda i: (0, 0, 0)),       # bs_full
                pl.BlockSpec((k_flows, hidden, d), lambda i: (0, 0, 0)),  # Wt_full
                pl.BlockSpec((k_flows, 1, d), lambda i: (0, 0, 0)),       # bt_full
            ],
            out_specs=pl.BlockSpec((tile_m, out_w), lambda i: (i, 0)),    # lane-dense
        ),
        compiler_params=pltpu.CompilerParams(
            dimension_semantics=("parallel",),     # batch tiles -> megacore on v7x
            vmem_limit_bytes=vmem_limit,
        ),
    )(x, w1, b1, ws, bs, wt, bt)

    # Un-permute all K flow outputs with a single XLA gather (layout plumbing).
    zs_flat = jnp.take(slab[:, :k_flows * d], gather_idx, axis=1)
    zs = [x] + [zs_flat[:, k * d:(k + 1) * d] for k in range(k_flows)]
    log_det = slab[:, k_flows * d]
    return zs, log_det


# ----------------------------------------------------------------------------
# Pure-JAX reference (mirrors the PyTorch AffineHalfFlow composition exactly).
# ----------------------------------------------------------------------------
def _reference_forward(x, flow_params):
    hp = lax.Precision.HIGHEST
    m, _ = x.shape
    log_det = jnp.zeros((m,), jnp.float32)
    zs = [x]
    for parity, (w1, b1, ws, bs, wt, bt) in flow_params:
        x0, x1 = x[:, 0::2], x[:, 1::2]
        if parity:
            x0, x1 = x1, x0
        h = jnp.tanh(jnp.dot(x0, w1, precision=hp) + b1)
        s = jnp.dot(h, ws, precision=hp) + bs
        t = jnp.dot(h, wt, precision=hp) + bt
        z1 = jnp.exp(s) * x1 + t
        z0 = x0
        if parity:
            z0, z1 = z1, z0
        x = jnp.concatenate([z0, z1], axis=1)
        log_det = log_det + jnp.sum(s, axis=1)
        zs.append(x)
    return zs, log_det


# ----------------------------------------------------------------------------
# Deterministic parameter construction.
# ----------------------------------------------------------------------------
def make_flow_params(key, num_flows, dim, hidden):
    half = dim // 2
    params = []
    for k in range(num_flows):
        key, k1, k2, k3 = jax.random.split(key, 4)
        w1 = jax.random.normal(k1, (half, hidden), jnp.float32) * 0.1
        b1 = jnp.zeros((1, hidden), jnp.float32)
        ws = jax.random.normal(k2, (hidden, half), jnp.float32) * 0.1
        bs = jnp.zeros((1, half), jnp.float32)
        wt = jax.random.normal(k3, (hidden, half), jnp.float32) * 0.1
        bt = jnp.zeros((1, half), jnp.float32)
        params.append((k % 2, (w1, b1, ws, bs, wt, bt)))
    return params


if __name__ == "__main__":
    m, dim, hidden, num_flows = 128, 8, 32, 4

    key = jax.random.PRNGKey(0)
    kx, kp = jax.random.split(key)
    x = jax.random.normal(kx, (m, dim), jnp.float32)
    flow_params = make_flow_params(kp, num_flows, dim, hidden)

    zs, log_det = normalizing_flow_forward(x, flow_params)   # auto tile_m -> 2 grid steps
    jax.block_until_ready(zs[-1])
    jax.block_until_ready(log_det)

    assert len(zs) == num_flows + 1
    assert zs[-1].shape == (m, dim)
    assert log_det.shape == (m,)

    zs_ref, ld_ref = _reference_forward(x, flow_params)
    for a, b in zip(zs, zs_ref):
        assert jnp.allclose(a, b, rtol=1e-3, atol=1e-3), "zs mismatch vs reference"
    assert jnp.allclose(log_det, ld_ref, rtol=1e-3, atol=1e-3), "log_det mismatch"

    print("KERNEL_OK")
</pallas_src>

<mosaic_0001>
module attributes {stable_mosaic.version = 11 : i64} {
  func.func @_fused_flow_kernel(%arg0: i32, %arg1: memref<64x8xf32, #tpu.memory_space<vmem>>, %arg2: memref<4x8x32xf32, #tpu.memory_space<vmem>>, %arg3: memref<4x1x32xf32, #tpu.memory_space<vmem>>, %arg4: memref<4x32x8xf32, #tpu.memory_space<vmem>>, %arg5: memref<4x1x8xf32, #tpu.memory_space<vmem>>, %arg6: memref<4x32x8xf32, #tpu.memory_space<vmem>>, %arg7: memref<4x1x8xf32, #tpu.memory_space<vmem>>, %arg8: memref<64x40xf32, #tpu.memory_space<vmem>>) attributes {dimension_semantics = [#tpu.dimension_semantics<parallel>], iteration_bounds = array<i64: 2>, scalar_prefetch = 0 : i64, scratch_operands = 0 : i64, tpu.core_type = #tpu.core_type<tc>, window_params = [{transform_indices = @transform_0, window_bounds = array<i64: 64, 8>}, {pipeline_mode = #tpu.pipeline_mode<synchronous>, transform_indices = @transform_1, window_bounds = array<i64: 4, 8, 32>}, {pipeline_mode = #tpu.pipeline_mode<synchronous>, transform_indices = @transform_2, window_bounds = array<i64: 4, 1, 32>}, {pipeline_mode = #tpu.pipeline_mode<synchronous>, transform_indices = @transform_3, window_bounds = array<i64: 4, 32, 8>}, {pipeline_mode = #tpu.pipeline_mode<synchronous>, transform_indices = @transform_4, window_bounds = array<i64: 4, 1, 8>}, {pipeline_mode = #tpu.pipeline_mode<synchronous>, transform_indices = @transform_5, window_bounds = array<i64: 4, 32, 8>}, {pipeline_mode = #tpu.pipeline_mode<synchronous>, transform_indices = @transform_6, window_bounds = array<i64: 4, 1, 8>}, {transform_indices = @transform_7, window_bounds = array<i64: 64, 40>}]} {
    %c0 = arith.constant 0 : index
    %c0_0 = arith.constant 0 : index
    %0 = vector.load %arg1[%c0, %c0_0] : memref<64x8xf32, #tpu.memory_space<vmem>>, vector<64x8xf32>
    %cst = arith.constant 0.000000e+00 : f32
    %1 = vector.broadcast %cst : f32 to vector<64x1xf32>
    %c0_1 = arith.constant 0 : index
    %c0_2 = arith.constant 0 : index
    %c0_3 = arith.constant 0 : index
    %2 = vector.load %arg2[%c0_1, %c0_2, %c0_3] : memref<4x8x32xf32, #tpu.memory_space<vmem>>, vector<1x8x32xf32>
    %3 = vector.shape_cast %2 : vector<1x8x32xf32> to vector<8x32xf32>
    %cst_4 = arith.constant dense<0.000000e+00> : vector<64x32xf32>
    %4 = tpu.matmul %0, %3, %cst_4 {dimension_numbers = #tpu.dot_dimension_numbers<[1], [0], [0], [1], [0, 0, 1, 1], [], []>} : vector<64x8xf32>, vector<8x32xf32>, vector<64x32xf32> -> vector<64x32xf32>
    %c0_5 = arith.constant 0 : index
    %c0_6 = arith.constant 0 : index
    %c0_7 = arith.constant 0 : index
    %5 = vector.load %arg3[%c0_5, %c0_6, %c0_7] : memref<4x1x32xf32, #tpu.memory_space<vmem>>, vector<1x1x32xf32>
    %6 = vector.shape_cast %5 : vector<1x1x32xf32> to vector<1x32xf32>
    %7 = vector.broadcast %6 : vector<1x32xf32> to vector<64x32xf32>
    %8 = arith.addf %4, %7 : vector<64x32xf32>
    %9 = math.tanh %8 : vector<64x32xf32>
    %c0_8 = arith.constant 0 : index
    %c0_9 = arith.constant 0 : index
    %c0_10 = arith.constant 0 : index
    %10 = vector.load %arg4[%c0_8, %c0_9, %c0_10] : memref<4x32x8xf32, #tpu.memory_space<vmem>>, vector<1x32x8xf32>
    %11 = vector.shape_cast %10 : vector<1x32x8xf32> to vector<32x8xf32>
    %cst_11 = arith.constant dense<0.000000e+00> : vector<64x8xf32>
    %12 = tpu.matmul %9, %11, %cst_11 {dimension_numbers = #tpu.dot_dimension_numbers<[1], [0], [0], [1], [0, 0, 1, 1], [], []>} : vector<64x32xf32>, vector<32x8xf32>, vector<64x8xf32> -> vector<64x8xf32>
    %c0_12 = arith.constant 0 : index
    %c0_13 = arith.constant 0 : index
    %c0_14 = arith.constant 0 : index
    %13 = vector.load %arg5[%c0_12, %c0_13, %c0_14] : memref<4x1x8xf32, #tpu.memory_space<vmem>>, vector<1x1x8xf32>
    %14 = vector.shape_cast %13 : vector<1x1x8xf32> to vector<1x8xf32>
    %15 = vector.broadcast %14 : vector<1x8xf32> to vector<64x8xf32>
    %16 = arith.addf %12, %15 : vector<64x8xf32>
    %c0_15 = arith.constant 0 : index
    %c0_16 = arith.constant 0 : index
    %c0_17 = arith.constant 0 : index
    %17 = vector.load %arg6[%c0_15, %c0_16, %c0_17] : memref<4x32x8xf32, #tpu.memory_space<vmem>>, vector<1x32x8xf32>
    %18 = vector.shape_cast %17 : vector<1x32x8xf32> to vector<32x8xf32>
    %cst_18 = arith.constant dense<0.000000e+00> : vector<64x8xf32>
    %19 = tpu.matmul %9, %18, %cst_18 {dimension_numbers = #tpu.dot_dimension_numbers<[1], [0], [0], [1], [0, 0, 1, 1], [], []>} : vector<64x32xf32>, vector<32x8xf32>, vector<64x8xf32> -> vector<64x8xf32>
    %c0_19 = arith.constant 0 : index
    %c0_20 = arith.constant 0 : index
    %c0_21 = arith.constant 0 : index
    %20 = vector.load %arg7[%c0_19, %c0_20, %c0_21] : memref<4x1x8xf32, #tpu.memory_space<vmem>>, vector<1x1x8xf32>
    %21 = vector.shape_cast %20 : vector<1x1x8xf32> to vector<1x8xf32>
    %22 = vector.broadcast %21 : vector<1x8xf32> to vector<64x8xf32>
    %23 = arith.addf %19, %22 : vector<64x8xf32>
    %24 = math.exp %16 : vector<64x8xf32>
    %25 = arith.mulf %24, %0 : vector<64x8xf32>
    %26 = arith.addf %25, %23 : vector<64x8xf32>
    %cst_22 = arith.constant dense<0.000000e+00> : vector<64xf32>
    %27 = vector.multi_reduction <add>, %16, %cst_22 [1] : vector<64x8xf32> to vector<64xf32>
    %28 = vector.shape_cast %27 : vector<64xf32> to vector<64x1xf32>
    %29 = arith.addf %1, %28 : vector<64x1xf32>
    %c1 = arith.constant 1 : index
    %c0_23 = arith.constant 0 : index
    %c0_24 = arith.constant 0 : index
    %30 = vector.load %arg2[%c1, %c0_23, %c0_24] : memref<4x8x32xf32, #tpu.memory_space<vmem>>, vector<1x8x32xf32>
    %31 = vector.shape_cast %30 : vector<1x8x32xf32> to vector<8x32xf32>
    %cst_25 = arith.constant dense<0.000000e+00> : vector<64x32xf32>
    %32 = tpu.matmul %26, %31, %cst_25 {dimension_numbers = #tpu.dot_dimension_numbers<[1], [0], [0], [1], [0, 0, 1, 1], [], []>} : vector<64x8xf32>, vector<8x32xf32>, vector<64x32xf32> -> vector<64x32xf32>
    %c1_26 = arith.constant 1 : index
    %c0_27 = arith.constant 0 : index
    %c0_28 = arith.constant 0 : index
    %33 = vector.load %arg3[%c1_26, %c0_27, %c0_28] : memref<4x1x32xf32, #tpu.memory_space<vmem>>, vector<1x1x32xf32>
    %34 = vector.shape_cast %33 : vector<1x1x32xf32> to vector<1x32xf32>
    %35 = vector.broadcast %34 : vector<1x32xf32> to vector<64x32xf32>
    %36 = arith.addf %32, %35 : vector<64x32xf32>
    %37 = math.tanh %36 : vector<64x32xf32>
    %c1_29 = arith.constant 1 : index
    %c0_30 = arith.constant 0 : index
    %c0_31 = arith.constant 0 : index
    %38 = vector.load %arg4[%c1_29, %c0_30, %c0_31] : memref<4x32x8xf32, #tpu.memory_space<vmem>>, vector<1x32x8xf32>
    %39 = vector.shape_cast %38 : vector<1x32x8xf32> to vector<32x8xf32>
    %cst_32 = arith.constant dense<0.000000e+00> : vector<64x8xf32>
    %40 = tpu.matmul %37, %39, %cst_32 {dimension_numbers = #tpu.dot_dimension_numbers<[1], [0], [0], [1], [0, 0, 1, 1], [], []>} : vector<64x32xf32>, vector<32x8xf32>, vector<64x8xf32> -> vector<64x8xf32>
    %c1_33 = arith.constant 1 : index
    %c0_34 = arith.constant 0 : index
    %c0_35 = arith.constant 0 : index
    %41 = vector.load %arg5[%c1_33, %c0_34, %c0_35] : memref<4x1x8xf32, #tpu.memory_space<vmem>>, vector<1x1x8xf32>
    %42 = vector.shape_cast %41 : vector<1x1x8xf32> to vector<1x8xf32>
    %43 = vector.broadcast %42 : vector<1x8xf32> to vector<64x8xf32>
    %44 = arith.addf %40, %43 : vector<64x8xf32>
    %c1_36 = arith.constant 1 : index
    %c0_37 = arith.constant 0 : index
    %c0_38 = arith.constant 0 : index
    %45 = vector.load %arg6[%c1_36, %c0_37, %c0_38] : memref<4x32x8xf32, #tpu.memory_space<vmem>>, vector<1x32x8xf32>
    %46 = vector.shape_cast %45 : vector<1x32x8xf32> to vector<32x8xf32>
    %cst_39 = arith.constant dense<0.000000e+00> : vector<64x8xf32>
    %47 = tpu.matmul %37, %46, %cst_39 {dimension_numbers = #tpu.dot_dimension_numbers<[1], [0], [0], [1], [0, 0, 1, 1], [], []>} : vector<64x32xf32>, vector<32x8xf32>, vector<64x8xf32> -> vector<64x8xf32>
    %c1_40 = arith.constant 1 : index
    %c0_41 = arith.constant 0 : index
    %c0_42 = arith.constant 0 : index
    %48 = vector.load %arg7[%c1_40, %c0_41, %c0_42] : memref<4x1x8xf32, #tpu.memory_space<vmem>>, vector<1x1x8xf32>
    %49 = vector.shape_cast %48 : vector<1x1x8xf32> to vector<1x8xf32>
    %50 = vector.broadcast %49 : vector<1x8xf32> to vector<64x8xf32>
    %51 = arith.addf %47, %50 : vector<64x8xf32>
    %52 = math.exp %44 : vector<64x8xf32>
    %53 = arith.mulf %52, %26 : vector<64x8xf32>
    %54 = arith.addf %53, %51 : vector<64x8xf32>
    %cst_43 = arith.constant dense<0.000000e+00> : vector<64xf32>
    %55 = vector.multi_reduction <add>, %44, %cst_43 [1] : vector<64x8xf32> to vector<64xf32>
    %56 = vector.shape_cast %55 : vector<64xf32> to vector<64x1xf32>
    %57 = arith.addf %29, %56 : vector<64x1xf32>
    %c2 = arith.constant 2 : index
    %c0_44 = arith.constant 0 : index
    %c0_45 = arith.constant 0 : index
    %58 = vector.load %arg2[%c2, %c0_44, %c0_45] : memref<4x8x32xf32, #tpu.memory_space<vmem>>, vector<1x8x32xf32>
    %59 = vector.shape_cast %58 : vector<1x8x32xf32> to vector<8x32xf32>
    %cst_46 = arith.constant dense<0.000000e+00> : vector<64x32xf32>
    %60 = tpu.matmul %54, %59, %cst_46 {dimension_numbers = #tpu.dot_dimension_numbers<[1], [0], [0], [1], [0, 0, 1, 1], [], []>} : vector<64x8xf32>, vector<8x32xf32>, vector<64x32xf32> -> vector<64x32xf32>
    %c2_47 = arith.constant 2 : index
    %c0_48 = arith.constant 0 : index
    %c0_49 = arith.constant 0 : index
    %61 = vector.load %arg3[%c2_47, %c0_48, %c0_49] : memref<4x1x32xf32, #tpu.memory_space<vmem>>, vector<1x1x32xf32>
    %62 = vector.shape_cast %61 : vector<1x1x32xf32> to vector<1x32xf32>
    %63 = vector.broadcast %62 : vector<1x32xf32> to vector<64x32xf32>
    %64 = arith.addf %60, %63 : vector<64x32xf32>
    %65 = math.tanh %64 : vector<64x32xf32>
    %c2_50 = arith.constant 2 : index
    %c0_51 = arith.constant 0 : index
    %c0_52 = arith.constant 0 : index
    %66 = vector.load %arg4[%c2_50, %c0_51, %c0_52] : memref<4x32x8xf32, #tpu.memory_space<vmem>>, vector<1x32x8xf32>
    %67 = vector.shape_cast %66 : vector<1x32x8xf32> to vector<32x8xf32>
    %cst_53 = arith.constant dense<0.000000e+00> : vector<64x8xf32>
    %68 = tpu.matmul %65, %67, %cst_53 {dimension_numbers = #tpu.dot_dimension_numbers<[1], [0], [0], [1], [0, 0, 1, 1], [], []>} : vector<64x32xf32>, vector<32x8xf32>, vector<64x8xf32> -> vector<64x8xf32>
    %c2_54 = arith.constant 2 : index
    %c0_55 = arith.constant 0 : index
    %c0_56 = arith.constant 0 : index
    %69 = vector.load %arg5[%c2_54, %c0_55, %c0_56] : memref<4x1x8xf32, #tpu.memory_space<vmem>>, vector<1x1x8xf32>
    %70 = vector.shape_cast %69 : vector<1x1x8xf32> to vector<1x8xf32>
    %71 = vector.broadcast %70 : vector<1x8xf32> to vector<64x8xf32>
    %72 = arith.addf %68, %71 : vector<64x8xf32>
    %c2_57 = arith.constant 2 : index
    %c0_58 = arith.constant 0 : index
    %c0_59 = arith.constant 0 : index
    %73 = vector.load %arg6[%c2_57, %c0_58, %c0_59] : memref<4x32x8xf32, #tpu.memory_space<vmem>>, vector<1x32x8xf32>
    %74 = vector.shape_cast %73 : vector<1x32x8xf32> to vector<32x8xf32>
    %cst_60 = arith.constant dense<0.000000e+00> : vector<64x8xf32>
    %75 = tpu.matmul %65, %74, %cst_60 {dimension_numbers = #tpu.dot_dimension_numbers<[1], [0], [0], [1], [0, 0, 1, 1], [], []>} : vector<64x32xf32>, vector<32x8xf32>, vector<64x8xf32> -> vector<64x8xf32>
    %c2_61 = arith.constant 2 : index
    %c0_62 = arith.constant 0 : index
    %c0_63 = arith.constant 0 : index
    %76 = vector.load %arg7[%c2_61, %c0_62, %c0_63] : memref<4x1x8xf32, #tpu.memory_space<vmem>>, vector<1x1x8xf32>
    %77 = vector.shape_cast %76 : vector<1x1x8xf32> to vector<1x8xf32>
    %78 = vector.broadcast %77 : vector<1x8xf32> to vector<64x8xf32>
    %79 = arith.addf %75, %78 : vector<64x8xf32>
    %80 = math.exp %72 : vector<64x8xf32>
    %81 = arith.mulf %80, %54 : vector<64x8xf32>
    %82 = arith.addf %81, %79 : vector<64x8xf32>
    %cst_64 = arith.constant dense<0.000000e+00> : vector<64xf32>
    %83 = vector.multi_reduction <add>, %72, %cst_64 [1] : vector<64x8xf32> to vector<64xf32>
    %84 = vector.shape_cast %83 : vector<64xf32> to vector<64x1xf32>
    %85 = arith.addf %57, %84 : vector<64x1xf32>
    %c3 = arith.constant 3 : index
    %c0_65 = arith.constant 0 : index
    %c0_66 = arith.constant 0 : index
    %86 = vector.load %arg2[%c3, %c0_65, %c0_66] : memref<4x8x32xf32, #tpu.memory_space<vmem>>, vector<1x8x32xf32>
    %87 = vector.shape_cast %86 : vector<1x8x32xf32> to vector<8x32xf32>
    %cst_67 = arith.constant dense<0.000000e+00> : vector<64x32xf32>
    %88 = tpu.matmul %82, %87, %cst_67 {dimension_numbers = #tpu.dot_dimension_numbers<[1], [0], [0], [1], [0, 0, 1, 1], [], []>} : vector<64x8xf32>, vector<8x32xf32>, vector<64x32xf32> -> vector<64x32xf32>
    %c3_68 = arith.constant 3 : index
    %c0_69 = arith.constant 0 : index
    %c0_70 = arith.constant 0 : index
    %89 = vector.load %arg3[%c3_68, %c0_69, %c0_70] : memref<4x1x32xf32, #tpu.memory_space<vmem>>, vector<1x1x32xf32>
    %90 = vector.shape_cast %89 : vector<1x1x32xf32> to vector<1x32xf32>
    %91 = vector.broadcast %90 : vector<1x32xf32> to vector<64x32xf32>
    %92 = arith.addf %88, %91 : vector<64x32xf32>
    %93 = math.tanh %92 : vector<64x32xf32>
    %c3_71 = arith.constant 3 : index
    %c0_72 = arith.constant 0 : index
    %c0_73 = arith.constant 0 : index
    %94 = vector.load %arg4[%c3_71, %c0_72, %c0_73] : memref<4x32x8xf32, #tpu.memory_space<vmem>>, vector<1x32x8xf32>
    %95 = vector.shape_cast %94 : vector<1x32x8xf32> to vector<32x8xf32>
    %cst_74 = arith.constant dense<0.000000e+00> : vector<64x8xf32>
    %96 = tpu.matmul %93, %95, %cst_74 {dimension_numbers = #tpu.dot_dimension_numbers<[1], [0], [0], [1], [0, 0, 1, 1], [], []>} : vector<64x32xf32>, vector<32x8xf32>, vector<64x8xf32> -> vector<64x8xf32>
    %c3_75 = arith.constant 3 : index
    %c0_76 = arith.constant 0 : index
    %c0_77 = arith.constant 0 : index
    %97 = vector.load %arg5[%c3_75, %c0_76, %c0_77] : memref<4x1x8xf32, #tpu.memory_space<vmem>>, vector<1x1x8xf32>
    %98 = vector.shape_cast %97 : vector<1x1x8xf32> to vector<1x8xf32>
    %99 = vector.broadcast %98 : vector<1x8xf32> to vector<64x8xf32>
    %100 = arith.addf %96, %99 : vector<64x8xf32>
    %c3_78 = arith.constant 3 : index
    %c0_79 = arith.constant 0 : index
    %c0_80 = arith.constant 0 : index
    %101 = vector.load %arg6[%c3_78, %c0_79, %c0_80] : memref<4x32x8xf32, #tpu.memory_space<vmem>>, vector<1x32x8xf32>
    %102 = vector.shape_cast %101 : vector<1x32x8xf32> to vector<32x8xf32>
    %cst_81 = arith.constant dense<0.000000e+00> : vector<64x8xf32>
    %103 = tpu.matmul %93, %102, %cst_81 {dimension_numbers = #tpu.dot_dimension_numbers<[1], [0], [0], [1], [0, 0, 1, 1], [], []>} : vector<64x32xf32>, vector<32x8xf32>, vector<64x8xf32> -> vector<64x8xf32>
    %c3_82 = arith.constant 3 : index
    %c0_83 = arith.constant 0 : index
    %c0_84 = arith.constant 0 : index
    %104 = vector.load %arg7[%c3_82, %c0_83, %c0_84] : memref<4x1x8xf32, #tpu.memory_space<vmem>>, vector<1x1x8xf32>
    %105 = vector.shape_cast %104 : vector<1x1x8xf32> to vector<1x8xf32>
    %106 = vector.broadcast %105 : vector<1x8xf32> to vector<64x8xf32>
    %107 = arith.addf %103, %106 : vector<64x8xf32>
    %108 = math.exp %100 : vector<64x8xf32>
    %109 = arith.mulf %108, %82 : vector<64x8xf32>
    %110 = arith.addf %109, %107 : vector<64x8xf32>
    %cst_85 = arith.constant dense<0.000000e+00> : vector<64xf32>
    %111 = vector.multi_reduction <add>, %100, %cst_85 [1] : vector<64x8xf32> to vector<64xf32>
    %112 = vector.shape_cast %111 : vector<64xf32> to vector<64x1xf32>
    %113 = arith.addf %85, %112 : vector<64x1xf32>
    %114 = vector.shape_cast %113 : vector<64x1xf32> to vector<64x1xf32>
    %115 = vector.broadcast %114 : vector<64x1xf32> to vector<64x8xf32>
    %116 = tpu.concatenate %26, %54, %82, %110, %115 in 1 : vector<64x8xf32>, vector<64x8xf32>, vector<64x8xf32>, vector<64x8xf32>, vector<64x8xf32> -> vector<64x40xf32>
    %c0_86 = arith.constant 0 : index
    %c0_87 = arith.constant 0 : index
    %117 = vector.load %arg8[%c0_86, %c0_87] : memref<64x40xf32, #tpu.memory_space<vmem>>, vector<64x40xf32>
    tpu.vector_store %arg8[%c0_86, %c0_87], %116 {strides = array<i32>} : memref<64x40xf32, #tpu.memory_space<vmem>>, vector<64x40xf32>,
    return
  }
  func.func @transform_0(%arg0: i32) -> (i32, i32) {
    %c0_i32 = arith.constant 0 : i32
    %c0_i32_0 = arith.constant 0 : i32
    return %arg0, %c0_i32 : i32, i32
  }
  func.func @transform_1(%arg0: i32) -> (i32, i32, i32) {
    %c0_i32 = arith.constant 0 : i32
    %c0_i32_0 = arith.constant 0 : i32
    %c0_i32_1 = arith.constant 0 : i32
    %c0_i32_2 = arith.constant 0 : i32
    return %c0_i32, %c0_i32_0, %c0_i32_1 : i32, i32, i32
  }
  func.func @transform_2(%arg0: i32) -> (i32, i32, i32) {
    %c0_i32 = arith.constant 0 : i32
    %c0_i32_0 = arith.constant 0 : i32
    %c0_i32_1 = arith.constant 0 : i32
    %c0_i32_2 = arith.constant 0 : i32
    return %c0_i32, %c0_i32_0, %c0_i32_1 : i32, i32, i32
  }
  func.func @transform_3(%arg0: i32) -> (i32, i32, i32) {
    %c0_i32 = arith.constant 0 : i32
    %c0_i32_0 = arith.constant 0 : i32
    %c0_i32_1 = arith.constant 0 : i32
    %c0_i32_2 = arith.constant 0 : i32
    return %c0_i32, %c0_i32_0, %c0_i32_1 : i32, i32, i32
  }
  func.func @transform_4(%arg0: i32) -> (i32, i32, i32) {
    %c0_i32 = arith.constant 0 : i32
    %c0_i32_0 = arith.constant 0 : i32
    %c0_i32_1 = arith.constant 0 : i32
    %c0_i32_2 = arith.constant 0 : i32
    return %c0_i32, %c0_i32_0, %c0_i32_1 : i32, i32, i32
  }
  func.func @transform_5(%arg0: i32) -> (i32, i32, i32) {
    %c0_i32 = arith.constant 0 : i32
    %c0_i32_0 = arith.constant 0 : i32
    %c0_i32_1 = arith.constant 0 : i32
    %c0_i32_2 = arith.constant 0 : i32
    return %c0_i32, %c0_i32_0, %c0_i32_1 : i32, i32, i32
  }
  func.func @transform_6(%arg0: i32) -> (i32, i32, i32) {
    %c0_i32 = arith.constant 0 : i32
    %c0_i32_0 = arith.constant 0 : i32
    %c0_i32_1 = arith.constant 0 : i32
    %c0_i32_2 = arith.constant 0 : i32
    return %c0_i32, %c0_i32_0, %c0_i32_1 : i32, i32, i32
  }
  func.func @transform_7(%arg0: i32) -> (i32, i32) {
    %c0_i32 = arith.constant 0 : i32
    %c0_i32_0 = arith.constant 0 : i32
    return %arg0, %c0_i32 : i32, i32
  }
}

</mosaic_0001>

<bundles_post_ra>
// kernel: tpu_custom_call.1
= control target key start
LH: loop header
LB: loop body
LE: loop exit
PB: predicated region body
PF: predicated region fallthrough
CT: control target
= control target key end

     0   :  { %s1890_s24 = smov 0   ;;  %s2604_s0 = inlined_call_operand.vmem [shape: f32[128,8], index: 0, kind: input, shape index: {}]   ;;  %s2605_s1 = inlined_call_operand.vmem [shape: f32[4,8,32], index: 1, kind: input, shape index: {}]   ;;  %s2606_s2 = inlined_call_operand.vmem [shape: f32[4,1,32], index: 2, kind: input, shape index: {}]   ;;  %s2607_s3 = inlined_call_operand.vmem [shape: f32[4,32,8], index: 3, kind: input, shape index: {}]   ;;  %s2608_s4 = inlined_call_operand.vmem [shape: f32[4,1,8], index: 4, kind: input, shape index: {}]   ;;  %s2609_s5 = inlined_call_operand.vmem [shape: f32[4,32,8], index: 5, kind: input, shape index: {}]   ;;  %s2610_s6 = inlined_call_operand.vmem [shape: f32[4,1,8], index: 6, kind: input, shape index: {}]   ;;  %s2611_s7 = inlined_call_operand.vmem [shape: f32[128,40], index: 7, kind: output, shape index: {}]  }
   0x1 LB: > { %s1545_s25 = sadd.s32 4294967295, %s1845_s24   ;;  %p1549_p0 = scmp.ge.s32.totalorder %s1845_s24, 1  ;;  %s1845_s24 = sphi %s1890_s24, %s17_s24  }
   0x2   : > { %p238_p1 = scmp.lt.s32.totalorder %s1845_s24, 3 }
   0x4   : > { %p239_p2 = pnand %p1549_p0, %p238_p1 }
   0x5   : > { %s1550_s28 = sshll.u32 (!%p239_p2), %s1545_s25, 3  ;;  %s1847_s18 = smov (!%p239_p2), 8  }
   0x6   : > { %242 = sbr.rel (%p239_p2) target bundleno = 1387 (0x56b), region = 48  ;;  %p271_p3 = scmp.lt.s32.totalorder (!%p239_p2), %s1550_s28, 15 }
   0x7   : > { %s1848_s23 = smov (!%p239_p2), 16   ;;  %s1849_s27 = smov (!%p239_p2), 24  }
   0xb   : > { %v290_v0 = vld [vmem:[%s2605_s1] sm:$0xff]  ;;  %s2613_s28 = smov (!%p271_p3, %s1550_s28), 15  ;;  %vm295_vm0 = vcmask 64512   ;;  %v372_v9 = vld [vmem:[%s2607_s3 + $0x18] sm:$0xff]  ;;  %v371_v11 = vld [vmem:[%s2607_s3 + $0x10] sm:$0xff]  ;;  %vm377_vm1 = vcmask 261120  }
   0xc   : > { %335 = vmatpush.msra.mxu0 %v290_v0  ;;  %s1551_s29 = sshll.u32 %s2613_s28, 3  ;;  %v446_v10 = vld [vmem:[%s2609_s5 + $0x18] sm:$0xff]  ;;  %414 = vmatpush.msra.mxu1 %v372_v9  ;;  %v445_v12 = vld [vmem:[%s2609_s5 + $0x10] sm:$0xff]  ;;  %v370_v13 = vld [vmem:[%s2607_s3 + $0x8] sm:$0xff]  ;;  %vm1454_vm2 = vcmask 130048   ;;  %vm1463_vm3 = vcmask 195584  }
   0xd   : > { %s274_s9 = scalar_lea.vmem %s2604_s0, %s1551_s29  ;;  %463 = vmatpush.msra.mxu2 %v446_v10  ;;  %v444_v14 = vld [vmem:[%s2609_s5 + $0x8] sm:$0xff]  ;;  %v369_v15 = vld [vmem:[%s2607_s3] sm:$0xff]  ;;  %vm1480_vm4 = vcmask 326656  }
   0xe   : > { %v1909_v1 = vld [vmem:[%s274_s9] sm:$0xff]  ;;  %v1913_v2 = vld [vmem:[%s274_s9 + $0x8] sm:$0xff]  ;;  %v1917_v3 = vld [vmem:[%s274_s9 + $0x10] sm:$0xff]  ;;  %415 = vmatpush.msra.mxu1 %v371_v11 }
   0xf   : > { %1554 = vmatmul.msk.f32.vlgmr.msra.gmra.mxu0 %vm295_vm0, %v1909_v1  ;;  %v1921_v4 = vld [vmem:[%s274_s9 + $0x18] sm:$0xff]  ;;  %v1925_v5 = vld [vmem:[%s274_s9 + $0x20] sm:$0xff]  ;;  %v1929_v6 = vld [vmem:[%s274_s9 + $0x28] sm:$0xff]  ;;  %464 = vmatpush.msra.mxu2 %v445_v12 }
  0x10   : > { %v1933_v7 = vld [vmem:[%s274_s9 + $0x30] sm:$0xff]  ;;  %v1937_v8 = vld [vmem:[%s274_s9 + $0x38] sm:$0xff]  ;;  %416 = vmatpush.msra.mxu1 %v370_v13  ;;  %v443_v16 = vld [vmem:[%s2609_s5] sm:$0xff]  ;;  %s2528_s9 = scalar_lea.vmem %s2611_s7, %s1551_s29 }
  0x11   : > { %465 = vmatpush.msra.mxu2 %v444_v14  ;;  %v1699_v17 = vld [vmem:[%s2606_s2] ss:$0 sm:$0xff]  ;;  %v1578_v42 = vld [vmem:[%s2605_s1 + $0x8] sm:$0xff] }
  0x12   : > { %417 = vmatpush.msra.mxu1 %v369_v15  ;;  %602 = vmatpush.msra.mxu3 %v1578_v42  ;;  %v1990_v43 = vld [vmem:[%s2608_s4] ss:$0 sm:$0xff] }
  0x13   : > { %466 = vmatpush.msra.mxu2 %v443_v16  ;;  %v1997_v49 = vld [vmem:[%s2610_s6] ss:$0 sm:$0xff] }
  0x17   : > { %1555 = vmatmul.msk.f32.gmra.mxu0 %vm295_vm0, %v1913_v2 }
  0x1f   : > { %1556 = vmatmul.msk.f32.gmra.mxu0 %vm295_vm0, %v1917_v3 }
  0x27   : > { %1557 = vmatmul.msk.f32.gmra.mxu0 %vm295_vm0, %v1921_v4 }
  0x2f   : > { %1558 = vmatmul.msk.f32.gmra.mxu0 %vm295_vm0, %v1925_v5 }
  0x37   : > { %1559 = vmatmul.msk.f32.gmra.mxu0 %vm295_vm0, %v1929_v6 }
  0x3f   : > { %1560 = vmatmul.msk.f32.gmra.mxu0 %vm295_vm0, %v1933_v7 }
  0x47   : > { %1561 = vmatmul.msk.f32.gmra.mxu0 %vm295_vm0, %v1937_v8 }
  0x8c   : > { %v337_v18 = vpop.f32.mrf.mxu0 }
  0x8d   : > { %v338_v19 = vadd.f32 %v1699_v17, %v337_v18 }
  0x8f   : > { %1711 = vtanh.f32 %v338_v19 }
  0x94   : > { %v340_v20 = vpop.f32.mrf.mxu0 }
  0x95   : > { %v1712_v21 = vpop.eup %1711  ;;  %v341_v22 = vadd.f32 %v1699_v17, %v340_v20 }
  0x96   : > { %1562 = vmatmul.msk.f32.vlgmr.msra.gmra.mxu1 %vm377_vm1, %v1712_v21  ;;  %1570 = vmatmul.msk.f32.vlgmr.msra.gmra.mxu2 %vm377_vm1, %v1712_v21 }
  0x97   : > { %1713 = vtanh.f32 %v341_v22 }
  0x9c   : > { %v343_v23 = vpop.f32.mrf.mxu0 }
  0x9d   : > { %v1714_v24 = vpop.eup %1713  ;;  %v344_v25 = vadd.f32 %v1699_v17, %v343_v23 }
  0x9e   : > { %1563 = vmatmul.msk.f32.gmra.mxu1 %vm377_vm1, %v1714_v24  ;;  %1571 = vmatmul.msk.f32.gmra.mxu2 %vm377_vm1, %v1714_v24 }
  0x9f   : > { %1715 = vtanh.f32 %v344_v25 }
  0xa4   : > { %v346_v26 = vpop.f32.mrf.mxu0 }
  0xa5   : > { %v1716_v27 = vpop.eup %1715  ;;  %v347_v28 = vadd.f32 %v1699_v17, %v346_v26 }
  0xa6   : > { %1564 = vmatmul.msk.f32.gmra.mxu1 %vm377_vm1, %v1716_v27  ;;  %1572 = vmatmul.msk.f32.gmra.mxu2 %vm377_vm1, %v1716_v27  ;;  %v1591_v27 = vld [vmem:[%s2607_s3 + $0x38] sm:$0xff] }
  0xa7   : > { %1717 = vtanh.f32 %v347_v28  ;;  %v1604_v28 = vld [vmem:[%s2609_s5 + $0x38] sm:$0xff]  ;;  %682 = vmatpush.msrb.mxu0 %v1591_v27 }
  0xa8   : > { %733 = vmatpush.msrb.mxu3 %v1604_v28 }
  0xac   : > { %v349_v29 = vpop.f32.mrf.mxu0 }
  0xad   : > { %v1718_v30 = vpop.eup %1717  ;;  %v350_v31 = vadd.f32 %v1699_v17, %v349_v29 }
  0xae   : > { %1565 = vmatmul.msk.f32.gmra.mxu1 %vm377_vm1, %v1718_v30  ;;  %1573 = vmatmul.msk.f32.gmra.mxu2 %vm377_vm1, %v1718_v30 }
  0xaf   : > { %1719 = vtanh.f32 %v350_v31  ;;  %v1603_v31 = vld [vmem:[%s2609_s5 + $0x30] sm:$0xff] }
  0xb0   : > { %734 = vmatpush.msrb.mxu3 %v1603_v31  ;;  %v2110_v31 = vld [vmem:[%s2608_s4 + $0x1] ss:$0 sm:$0xff] }
  0xb4   : > { %v352_v32 = vpop.f32.mrf.mxu0 }
  0xb5   : > { %v1720_v33 = vpop.eup %1719  ;;  %v353_v34 = vadd.f32 %v1699_v17, %v352_v32 }
  0xb6   : > { %1566 = vmatmul.msk.f32.gmra.mxu1 %vm377_vm1, %v1720_v33  ;;  %1574 = vmatmul.msk.f32.gmra.mxu2 %vm377_vm1, %v1720_v33 }
  0xb7   : > { %1721 = vtanh.f32 %v353_v34 }
  0xbc   : > { %v355_v35 = vpop.f32.mrf.mxu0 }
  0xbd   : > { %v1722_v36 = vpop.eup %1721  ;;  %v356_v37 = vadd.f32 %v1699_v17, %v355_v35 }
  0xbe   : > { %1567 = vmatmul.msk.f32.gmra.mxu1 %vm377_vm1, %v1722_v36  ;;  %1575 = vmatmul.msk.f32.gmra.mxu2 %vm377_vm1, %v1722_v36 }
  0xbf   : > { %1723 = vtanh.f32 %v356_v37 }
  0xc4   : > { %v358_v38 = vpop.f32.mrf.mxu0 }
  0xc5   : > { %v1724_v39 = vpop.eup %1723  ;;  %v359_v40 = vadd.f32 %v1699_v17, %v358_v38 }
  0xc6   : > { %1568 = vmatmul.msk.f32.gmra.mxu1 %vm377_vm1, %v1724_v39  ;;  %1576 = vmatmul.msk.f32.gmra.mxu2 %vm377_vm1, %v1724_v39 }
  0xc7   : > { %1725 = vtanh.f32 %v359_v40 }
  0xcd   : > { %v1726_v41 = vpop.eup %1725 }
  0xce   : > { %1569 = vmatmul.msk.f32.gmra.mxu1 %vm377_vm1, %v1726_v41  ;;  %1577 = vmatmul.msk.f32.gmra.mxu2 %vm377_vm1, %v1726_v41 }
 0x113   : > { %v419_v44 = vpop.f32.mrf.mxu1 }
 0x114   : > { %v420_v45 = vadd.f32 %v1990_v43, %v419_v44 }
 0x116   : > { %v492_v46 = vmul.f32 1.442695, %v420_v45  ;;  %v524_v47 = vsel %vm295_vm0, %v420_v45, 0.0 }
 0x117   : > { %525 = vadd.xlane.f32.xlu0 %v524_v47 }
 0x118   : > { %1727 = vpow2.f32 %v492_v46 }
 0x119   : > { %v468_v48 = vpop.f32.mrf.mxu2 }
 0x11a   : > { %v469_v54 = vadd.f32 %v1997_v49, %v468_v48 }
 0x11b   : > { %v422_v50 = vpop.f32.mrf.mxu1 }
 0x11c   : > { %v423_v51 = vadd.f32 %v1990_v43, %v422_v50 }
 0x11e   : > { %v1728_v52 = vpop.eup %1727  ;;  %v494_v53 = vmul.f32 1.442695, %v423_v51  ;;  %v527_v58 = vsel %vm295_vm0, %v423_v51, 0.0 }
 0x11f   : > { %v508_v55 = vmul.f32 %v1728_v52, %v1909_v1  ;;  %528 = vadd.xlane.f32.xlu0 %v527_v58 }
 0x120   : > { %1729 = vpow2.f32 %v494_v53 }
 0x121   : > { %v2002_v56 = vadd.f32 %v508_v55, %v469_v54  ;;  %v471_v57 = vpop.f32.mrf.mxu2 }
 0x122   : > { %v472_v61 = vadd.f32 %v1997_v49, %v471_v57 }
 0x123   : > { %v425_v59 = vpop.f32.mrf.mxu1  ;;  %1580 = vmatmul.msk.f32.vlgmr.msra.gmra.mxu3 %vm295_vm0, %v2002_v56 }
 0x124   : > { %v426_v60 = vadd.f32 %v1990_v43, %v425_v59 }
 0x126   : > { %v1730_v62 = vpop.eup %1729  ;;  %v496_v63 = vmul.f32 1.442695, %v426_v60  ;;  %v530_v12 = vsel %vm295_vm0, %v426_v60, 0.0 }
 0x127   : > { %v509_v0 = vmul.f32 %v1730_v62, %v1913_v2  ;;  %531 = vadd.xlane.f32.xlu1 %v530_v12  ;;  %v1702_v62 = vld [vmem:[%s2606_s2 + $0x1] ss:$0 sm:$0xff] }
 0x128   : > { %1731 = vpow2.f32 %v496_v63 }
 0x129   : > { %v2010_v1 = vadd.f32 %v509_v0, %v472_v61  ;;  %v474_v9 = vpop.f32.mrf.mxu2  ;;  %v1602_v61 = vld [vmem:[%s2609_s5 + $0x28] sm:$0xff] }
 0x12a   : > { %v475_v13 = vadd.f32 %v1997_v49, %v474_v9  ;;  %735 = vmatpush.msrb.mxu3 %v1602_v61 }
 0x12b   : > { %v428_v10 = vpop.f32.mrf.mxu1  ;;  %1581 = vmatmul.msk.f32.gmra.mxu3 %vm295_vm0, %v2010_v1 }
 0x12c   : > { %v429_v11 = vadd.f32 %v1990_v43, %v428_v10 }
 0x12e   : > { %v1732_v14 = vpop.eup %1731  ;;  %v498_v15 = vmul.f32 1.442695, %v429_v11  ;;  %v533_v19 = vsel %vm295_vm0, %v429_v11, 0.0 }
 0x12f   : > { %v510_v16 = vmul.f32 %v1732_v14, %v1917_v3  ;;  %534 = vadd.xlane.f32.xlu1 %v533_v19 }
 0x130   : > { %1733 = vpow2.f32 %v498_v15 }
 0x131   : > { %v2018_v2 = vadd.f32 %v510_v16, %v475_v13  ;;  %v477_v17 = vpop.f32.mrf.mxu2 }
 0x132   : > { %v478_v21 = vadd.f32 %v1997_v49, %v477_v17 }
 0x133   : > { %v431_v18 = vpop.f32.mrf.mxu1  ;;  %1582 = vmatmul.msk.f32.gmra.mxu3 %vm295_vm0, %v2018_v2 }
 0x134   : > { %v432_v20 = vadd.f32 %v1990_v43, %v431_v18 }
 0x136   : > { %v1734_v22 = vpop.eup %1733  ;;  %v500_v23 = vmul.f32 1.442695, %v432_v20  ;;  %v536_v29 = vsel %vm295_vm0, %v432_v20, 0.0 }
 0x137   : > { %v511_v24 = vmul.f32 %v1734_v22, %v1921_v4  ;;  %v1590_v4 = vld [vmem:[%s2607_s3 + $0x30] sm:$0xff]  ;;  %537 = vadd.xlane.f32.xlu2 %v536_v29 }
 0x138   : > { %1735 = vpow2.f32 %v500_v23  ;;  %683 = vmatpush.msrb.mxu0 %v1590_v4 }
 0x139   : > { %v2026_v3 = vadd.f32 %v511_v24, %v478_v21  ;;  %v480_v25 = vpop.f32.mrf.mxu2  ;;  %v1614_v21 = vld [vmem:[%s2605_s1 + $0x10] sm:$0xff] }
 0x13a   : > { %v481_v32 = vadd.f32 %v1997_v49, %v480_v25  ;;  %872 = vmatpush.msrb.mxu1 %v1614_v21 }
 0x13b   : > { %v434_v26 = vpop.f32.mrf.mxu1  ;;  %1583 = vmatmul.msk.f32.gmra.mxu3 %vm295_vm0, %v2026_v3 }
 0x13c   : > { %v435_v30 = vadd.f32 %v1990_v43, %v434_v26 }
 0x13e   : > { %v1736_v33 = vpop.eup %1735  ;;  %v502_v34 = vmul.f32 1.442695, %v435_v30  ;;  %v539_v38 = vsel %vm295_vm0, %v435_v30, 0.0 }
 0x13f   : > { %v512_v35 = vmul.f32 %v1736_v33, %v1925_v5  ;;  %540 = vadd.xlane.f32.xlu2 %v539_v38  ;;  %v2117_v38 = vld [vmem:[%s2610_s6 + $0x1] ss:$0 sm:$0xff] }
 0x140   : > { %1737 = vpow2.f32 %v502_v34 }
 0x141   : > { %v2046_v36 = vadd.f32 %v512_v35, %v481_v32  ;;  %v483_v37 = vpop.f32.mrf.mxu2 }
 0x142   : > { %v484_v41 = vadd.f32 %v1997_v49, %v483_v37 }
 0x143   : > { %v437_v39 = vpop.f32.mrf.mxu1  ;;  %1584 = vmatmul.msk.f32.gmra.mxu3 %vm295_vm0, %v2046_v36 }
 0x144   : > { %v438_v40 = vadd.f32 %v1990_v43, %v437_v39 }
 0x146   : > { %v1738_v42 = vpop.eup %1737  ;;  %v504_v44 = vmul.f32 1.442695, %v438_v40  ;;  %v542_v45 = vsel %vm295_vm0, %v438_v40, 0.0 }
 0x147   : > { %v513_v5 = vmul.f32 %v1738_v42, %v1929_v6  ;;  %543 = vadd.xlane.f32.xlu0 %v542_v45 }
 0x148   : > { %1739 = vpow2.f32 %v504_v44 }
 0x149   : > { %v2055_v46 = vadd.f32 %v513_v5, %v484_v41  ;;  %v486_v47 = vpop.f32.mrf.mxu2 }
 0x14a   : > { %v487_v51 = vadd.f32 %v1997_v49, %v486_v47 }
 0x14b   : > { %v440_v48 = vpop.f32.mrf.mxu1  ;;  %1585 = vmatmul.msk.f32.gmra.mxu3 %vm295_vm0, %v2055_v46 }
 0x14c   : > { %v441_v50 = vadd.f32 %v1990_v43, %v440_v48 }
 0x14e   : > { %v1740_v52 = vpop.eup %1739  ;;  %v506_v53 = vmul.f32 1.442695, %v441_v50  ;;  %v545_v43 = vsel %vm295_vm0, %v441_v50, 0.0 }
 0x14f   : > { %v514_v54 = vmul.f32 %v1740_v52, %v1933_v7  ;;  %v1589_v7 = vld [vmem:[%s2607_s3 + $0x28] sm:$0xff]  ;;  %546 = vadd.xlane.f32.xlu1 %v545_v43 }
 0x150   : > { %1741 = vpow2.f32 %v506_v53  ;;  %684 = vmatpush.msrb.mxu0 %v1589_v7 }
 0x151   : > { %v2062_v55 = vadd.f32 %v514_v54, %v487_v51  ;;  %v489_v6 = vpop.f32.mrf.mxu2 }
 0x152   : > { %v490_v57 = vadd.f32 %v1997_v49, %v489_v6  ;;  %v1588_v49 = vld [vmem:[%s2607_s3 + $0x20] sm:$0xff] }
 0x153   : > { %1586 = vmatmul.msk.f32.gmra.mxu3 %vm295_vm0, %v2062_v55  ;;  %685 = vmatpush.msrb.mxu0 %v1588_v49 }
 0x156   : > { %v1742_v58 = vpop.eup %1741 }
 0x157   : > { %v515_v59 = vmul.f32 %v1742_v58, %v1937_v8  ;;  %v1601_v8 = vld [vmem:[%s2609_s5 + $0x20] sm:$0xff] }
 0x158   : > { %736 = vmatpush.msrb.mxu3 %v1601_v8 }
 0x159   : > { %v2068_v60 = vadd.f32 %v515_v59, %v490_v57 }
 0x15b   : > { %1587 = vmatmul.msk.f32.gmra.mxu3 %vm295_vm0, %v2068_v60 }
 0x1a6   : > { %v604_v63 = vpop.f32.mrf.mxu3 }
 0x1a7   : > { %v605_v0 = vadd.f32 %v1702_v62, %v604_v63 }
 0x1a9   : > { %1743 = vtanh.f32 %v605_v0 }
 0x1ae   : > { %v607_v9 = vpop.f32.mrf.mxu3 }
 0x1af   : > { %v1744_v10 = vpop.eup %1743  ;;  %v608_v11 = vadd.f32 %v1702_v62, %v607_v9 }
 0x1b0   : > { %1593 = vmatmul.msk.f32.vlgmr.msrb.gmra.mxu0 %vm377_vm1, %v1744_v10  ;;  %1606 = vmatmul.msk.f32.vlgmr.msrb.gmra.mxu3 %vm377_vm1, %v1744_v10 }
 0x1b1   : > { %1745 = vtanh.f32 %v608_v11 }
 0x1b6   : > { %v610_v12 = vpop.f32.mrf.mxu3 }
 0x1b7   : > { %v1746_v13 = vpop.eup %1745  ;;  %v611_v14 = vadd.f32 %v1702_v62, %v610_v12 }
 0x1b8   : > { %1594 = vmatmul.msk.f32.gmra.mxu0 %vm377_vm1, %v1746_v13  ;;  %1607 = vmatmul.msk.f32.gmra.mxu3 %vm377_vm1, %v1746_v13 }
 0x1b9   : > { %1747 = vtanh.f32 %v611_v14 }
 0x1be   : > { %v613_v15 = vpop.f32.mrf.mxu3 }
 0x1bf   : > { %v1748_v16 = vpop.eup %1747  ;;  %v614_v17 = vadd.f32 %v1702_v62, %v613_v15 }
 0x1c0   : > { %1595 = vmatmul.msk.f32.gmra.mxu0 %vm377_vm1, %v1748_v16  ;;  %1608 = vmatmul.msk.f32.gmra.mxu3 %vm377_vm1, %v1748_v16 }
 0x1c1   : > { %1749 = vtanh.f32 %v614_v17 }
 0x1c6   : > { %v616_v18 = vpop.f32.mrf.mxu3 }
 0x1c7   : > { %v1750_v19 = vpop.eup %1749  ;;  %v617_v20 = vadd.f32 %v1702_v62, %v616_v18 }
 0x1c8   : > { %1596 = vmatmul.msk.f32.gmra.mxu0 %vm377_vm1, %v1750_v19  ;;  %1609 = vmatmul.msk.f32.gmra.mxu3 %vm377_vm1, %v1750_v19 }
 0x1c9   : > { %1751 = vtanh.f32 %v617_v20  ;;  %v1627_v20 = vld [vmem:[%s2607_s3 + $0x58] sm:$0xff] }
 0x1ca   : > { %952 = vmatpush.msrb.mxu2 %v1627_v20 }
 0x1ce   : > { %v619_v22 = vpop.f32.mrf.mxu3 }
 0x1cf   : > { %v1752_v23 = vpop.eup %1751  ;;  %v620_v24 = vadd.f32 %v1702_v62, %v619_v22 }
 0x1d0   : > { %1597 = vmatmul.msk.f32.gmra.mxu0 %vm377_vm1, %v1752_v23  ;;  %1610 = vmatmul.msk.f32.gmra.mxu3 %vm377_vm1, %v1752_v23 }
 0x1d1   : > { %1753 = vtanh.f32 %v620_v24 }
 0x1d6   : > { %v622_v25 = vpop.f32.mrf.mxu3 }
 0x1d7   : > { %v1754_v26 = vpop.eup %1753  ;;  %v623_v27 = vadd.f32 %v1702_v62, %v622_v25 }
 0x1d8   : > { %1598 = vmatmul.msk.f32.gmra.mxu0 %vm377_vm1, %v1754_v26  ;;  %1611 = vmatmul.msk.f32.gmra.mxu3 %vm377_vm1, %v1754_v26 }
 0x1d9   : > { %1755 = vtanh.f32 %v623_v27 }
 0x1de   : > { %v625_v28 = vpop.f32.mrf.mxu3 }
 0x1df   : > { %v1756_v29 = vpop.eup %1755  ;;  %v626_v4 = vadd.f32 %v1702_v62, %v625_v28 }
 0x1e0   : > { %1599 = vmatmul.msk.f32.gmra.mxu0 %vm377_vm1, %v1756_v29  ;;  %1612 = vmatmul.msk.f32.gmra.mxu3 %vm377_vm1, %v1756_v29 }
 0x1e1   : > { %1757 = vtanh.f32 %v626_v4 }
 0x1e7   : > { %v1758_v30 = vpop.eup %1757 }
 0x1e8   : > { %1600 = vmatmul.msk.f32.gmra.mxu0 %vm377_vm1, %v1758_v30  ;;  %1613 = vmatmul.msk.f32.gmra.mxu3 %vm377_vm1, %v1758_v30 }
 0x22d   : > { %v687_v32 = vpop.f32.mrf.mxu0 }
 0x22e   : > { %v688_v33 = vadd.f32 %v2110_v31, %v687_v32 }
 0x230   : > { %v762_v34 = vmul.f32 1.442695, %v688_v33  ;;  %v794_v35 = vsel %vm295_vm0, %v688_v33, 0.0 }
 0x231   : > { %795 = vadd.xlane.f32.xlu2 %v794_v35 }
 0x232   : > { %1759 = vpow2.f32 %v762_v34 }
 0x233   : > { %v738_v37 = vpop.f32.mrf.mxu3 }
 0x234   : > { %v739_v45 = vadd.f32 %v2117_v38, %v738_v37 }
 0x235   : > { %v690_v39 = vpop.f32.mrf.mxu0 }
 0x236   : > { %v691_v40 = vadd.f32 %v2110_v31, %v690_v39 }
 0x238   : > { %v1760_v41 = vpop.eup %1759  ;;  %v764_v42 = vmul.f32 1.442695, %v691_v40  ;;  %v797_v44 = vsel %vm295_vm0, %v691_v40, 0.0 }
 0x239   : > { %v778_v5 = vmul.f32 %v1760_v41, %v2002_v56  ;;  %798 = vadd.xlane.f32.xlu0 %v797_v44  ;;  %v1626_v44 = vld [vmem:[%s2607_s3 + $0x50] sm:$0xff] }
 0x23a   : > { %1761 = vpow2.f32 %v764_v42  ;;  %953 = vmatpush.msrb.mxu2 %v1626_v44 }
 0x23b   : > { %v2123_v47 = vadd.f32 %v778_v5, %v739_v45  ;;  %v741_v48 = vpop.f32.mrf.mxu3  ;;  %v1640_v45 = vld [vmem:[%s2609_s5 + $0x58] sm:$0xff] }
 0x23c   : > { %v742_v52 = vadd.f32 %v2117_v38, %v741_v48  ;;  %1003 = vmatpush.msra.mxu0 %v1640_v45  ;;  %v2253_v45 = vld [vmem:[%s2610_s6 + $0x2] ss:$0 sm:$0xff] }
 0x23d   : > { %v693_v50 = vpop.f32.mrf.mxu0  ;;  %1616 = vmatmul.msk.f32.vlgmr.msrb.gmra.mxu1 %vm295_vm0, %v2123_v47 }
 0x23e   : > { %v694_v51 = vadd.f32 %v2110_v31, %v693_v50 }
 0x240   : > { %v1762_v53 = vpop.eup %1761  ;;  %v766_v54 = vmul.f32 1.442695, %v694_v51  ;;  %v800_v6 = vsel %vm295_vm0, %v694_v51, 0.0 }
 0x241   : > { %v779_v57 = vmul.f32 %v1762_v53, %v2010_v1  ;;  %801 = vadd.xlane.f32.xlu1 %v800_v6  ;;  %v1639_v6 = vld [vmem:[%s2609_s5 + $0x50] sm:$0xff] }
 0x242   : > { %1763 = vpow2.f32 %v766_v54  ;;  %v1625_v54 = vld [vmem:[%s2607_s3 + $0x48] sm:$0xff]  ;;  %1004 = vmatpush.msra.mxu0 %v1639_v6 }
 0x243   : > { %v2131_v58 = vadd.f32 %v779_v57, %v742_v52  ;;  %v744_v59 = vpop.f32.mrf.mxu3  ;;  %954 = vmatpush.msrb.mxu2 %v1625_v54  ;;  %v1624_v57 = vld [vmem:[%s2607_s3 + $0x40] sm:$0xff] }
 0x244   : > { %v745_v61 = vadd.f32 %v2117_v38, %v744_v59  ;;  %v1638_v59 = vld [vmem:[%s2609_s5 + $0x48] sm:$0xff] }
 0x245   : > { %v696_v43 = vpop.f32.mrf.mxu0  ;;  %1617 = vmatmul.msk.f32.gmra.mxu1 %vm295_vm0, %v2131_v58  ;;  %955 = vmatpush.msrb.mxu2 %v1624_v57 }
 0x246   : > { %v697_v7 = vadd.f32 %v2110_v31, %v696_v43  ;;  %1005 = vmatpush.msra.mxu0 %v1638_v59  ;;  %v1637_v43 = vld [vmem:[%s2609_s5 + $0x40] sm:$0xff] }
 0x248   : > { %v1764_v49 = vpop.eup %1763  ;;  %v768_v8 = vmul.f32 1.442695, %v697_v7  ;;  %v803_v51 = vsel %vm295_vm0, %v697_v7, 0.0  ;;  %1006 = vmatpush.msra.mxu0 %v1637_v43 }
 0x249   : > { %v780_v62 = vmul.f32 %v1764_v49, %v2018_v2  ;;  %1366 = vrot.lane.b32.xlu2 %v2123_v47, %s1847_s18  ;;  %v1705_v49 = vld [vmem:[%s2606_s2 + $0x2] ss:$0 sm:$0xff] }
 0x24a   : > { %1765 = vpow2.f32 %v768_v8 }
 0x24b   : > { %v2140_v63 = vadd.f32 %v780_v62, %v745_v61  ;;  %v747_v0 = vpop.f32.mrf.mxu3 }
 0x24c   : > { %v748_v11 = vadd.f32 %v2117_v38, %v747_v0 }
 0x24d   : > { %v699_v9 = vpop.f32.mrf.mxu0  ;;  %1368 = vrot.lane.b32.xlu0 %v2131_v58, %s1847_s18  ;;  %1618 = vmatmul.msk.f32.gmra.mxu1 %vm295_vm0, %v2140_v63 }
 0x24e   : > { %v700_v10 = vadd.f32 %v2110_v31, %v699_v9 }
 0x250   : > { %v1766_v12 = vpop.eup %1765  ;;  %v770_v13 = vmul.f32 1.442695, %v700_v10  ;;  %v806_v53 = vsel %vm295_vm0, %v700_v10, 0.0 }
 0x251   : > { %v781_v14 = vmul.f32 %v1766_v12, %v2026_v3 }
 0x252   : > { %1767 = vpow2.f32 %v770_v13 }
 0x253   : > { %v2149_v15 = vadd.f32 %v781_v14, %v748_v11  ;;  %v750_v16 = vpop.f32.mrf.mxu3 }
 0x254   : > { %v751_v19 = vadd.f32 %v2117_v38, %v750_v16 }
 0x255   : > { %v702_v17 = vpop.f32.mrf.mxu0  ;;  %1619 = vmatmul.msk.f32.gmra.mxu1 %vm295_vm0, %v2149_v15 }
 0x256   : > { %v703_v18 = vadd.f32 %v2110_v31, %v702_v17 }
 0x258   : > { %v1768_v21 = vpop.eup %1767  ;;  %v772_v22 = vmul.f32 1.442695, %v703_v18 }
 0x259   : > { %v782_v23 = vmul.f32 %v1768_v21, %v2046_v36 }
 0x25a   : > { %1769 = vpow2.f32 %v772_v22  ;;  %1370 = vrot.lane.b32.xlu1 %v2140_v63, %s1847_s18 }
 0x25b   : > { %v2161_v24 = vadd.f32 %v782_v23, %v751_v19  ;;  %v753_v25 = vpop.f32.mrf.mxu3 }
 0x25c   : > { %v754_v28 = vadd.f32 %v2117_v38, %v753_v25 }
 0x25d   : > { %v705_v26 = vpop.f32.mrf.mxu0  ;;  %1620 = vmatmul.msk.f32.gmra.mxu1 %vm295_vm0, %v2161_v24 }
 0x25e   : > { %v706_v27 = vadd.f32 %v2110_v31, %v705_v26 }
 0x260   : > { %v1770_v29 = vpop.eup %1769  ;;  %v774_v4 = vmul.f32 1.442695, %v706_v27  ;;  %v812_v7 = vsel %vm295_vm0, %v706_v27, 0.0 }
 0x261   : > { %v783_v30 = vmul.f32 %v1770_v29, %v2055_v46 }
 0x262   : > { %1771 = vpow2.f32 %v774_v4 }
 0x263   : > { %v2168_v32 = vadd.f32 %v783_v30, %v754_v28  ;;  %v756_v33 = vpop.f32.mrf.mxu3  ;;  %v1650_v28 = vld [vmem:[%s2605_s1 + $0x18] sm:$0xff] }
 0x264   : > { %v757_v37 = vadd.f32 %v2117_v38, %v756_v33  ;;  %1142 = vmatpush.msra.mxu3 %v1650_v28 }
 0x265   : > { %v708_v34 = vpop.f32.mrf.mxu0  ;;  %1621 = vmatmul.msk.f32.gmra.mxu1 %vm295_vm0, %v2168_v32 }
 0x266   : > { %v709_v35 = vadd.f32 %v2110_v31, %v708_v34 }
 0x268   : > { %v1772_v39 = vpop.eup %1771  ;;  %v776_v40 = vmul.f32 1.442695, %v709_v35  ;;  %v815_v61 = vsel %vm295_vm0, %v709_v35, 0.0  ;;  %v2246_v35 = vld [vmem:[%s2608_s4 + $0x2] ss:$0 sm:$0xff] }
 0x269   : > { %v784_v41 = vmul.f32 %v1772_v39, %v2062_v55 }
 0x26a   : > { %1773 = vpow2.f32 %v776_v40 }
 0x26b   : > { %v2175_v42 = vadd.f32 %v784_v41, %v757_v37  ;;  %v759_v5 = vpop.f32.mrf.mxu3 }
 0x26c   : > { %v760_v31 = vadd.f32 %v2117_v38, %v759_v5  ;;  %v809_v38 = vsel %vm295_vm0, %v703_v18, 0.0 }
 0x26d   : > { %1622 = vmatmul.msk.f32.gmra.mxu1 %vm295_vm0, %v2175_v42 }
 0x270   : > { %v1774_v48 = vpop.eup %1773 }
 0x271   : > { %v785_v50 = vmul.f32 %v1774_v48, %v2068_v60 }
 0x272   : > { %804 = vadd.xlane.f32.xlu2 %v803_v51 }
 0x273   : > { %v2188_v52 = vadd.f32 %v785_v50, %v760_v31 }
 0x275   : > { %1623 = vmatmul.msk.f32.gmra.mxu1 %vm295_vm0, %v2188_v52 }
 0x277   : > { %807 = vadd.xlane.f32.xlu0 %v806_v53 }
 0x284   : > { %810 = vadd.xlane.f32.xlu1 %v809_v38 }
 0x28a   : > { %1372 = vrot.lane.b32.xlu2 %v2149_v15, %s1847_s18 }
 0x28b   : > { %1374 = vrot.lane.b32.xlu0 %v2161_v24, %s1847_s18 }
 0x29d   : > { %1378 = vrot.lane.b32.xlu1 %v2175_v42, %s1847_s18 }
 0x2b3   : > { %813 = vadd.xlane.f32.xlu2 %v812_v7 }
 0x2b5   : > { %816 = vadd.xlane.f32.xlu0 %v815_v61 }
 0x2ba   : > { %v874_v8 = vpop.f32.mrf.mxu1 }
 0x2bb   : > { %v875_v62 = vadd.f32 %v1705_v49, %v874_v8 }
 0x2bd   : > { %1775 = vtanh.f32 %v875_v62 }
 0x2c2   : > { %v877_v0 = vpop.f32.mrf.mxu1 }
 0x2c3   : > { %v1776_v9 = vpop.eup %1775  ;;  %v878_v10 = vadd.f32 %v1705_v49, %v877_v0 }
 0x2c4   : > { %1629 = vmatmul.msk.f32.vlgmr.msrb.gmra.mxu2 %vm377_vm1, %v1776_v9  ;;  %1642 = vmatmul.msk.f32.vlgmr.msra.gmra.mxu0 %vm377_vm1, %v1776_v9 }
 0x2c5   : > { %1777 = vtanh.f32 %v878_v10 }
 0x2c9   : > { %1380 = vrot.lane.b32.xlu0 %v2188_v52, %s1847_s18 }
 0x2ca   : > { %v880_v11 = vpop.f32.mrf.mxu1 }
 0x2cb   : > { %v1778_v12 = vpop.eup %1777  ;;  %v881_v13 = vadd.f32 %v1705_v49, %v880_v11  ;;  %1376 = vrot.lane.b32.xlu2 %v2168_v32, %s1847_s18 }
 0x2cc   : > { %1630 = vmatmul.msk.f32.gmra.mxu2 %vm377_vm1, %v1778_v12  ;;  %1643 = vmatmul.msk.f32.gmra.mxu0 %vm377_vm1, %v1778_v12 }
 0x2cd   : > { %1779 = vtanh.f32 %v881_v13 }
 0x2d2   : > { %v883_v14 = vpop.f32.mrf.mxu1 }
 0x2d3   : > { %v1780_v16 = vpop.eup %1779  ;;  %v884_v17 = vadd.f32 %v1705_v49, %v883_v14 }
 0x2d4   : > { %1631 = vmatmul.msk.f32.gmra.mxu2 %vm377_vm1, %v1780_v16  ;;  %1644 = vmatmul.msk.f32.gmra.mxu0 %vm377_vm1, %v1780_v16 }
 0x2d5   : > { %1781 = vtanh.f32 %v884_v17 }
 0x2da   : > { %v886_v18 = vpop.f32.mrf.mxu1 }
 0x2db   : > { %v1782_v19 = vpop.eup %1781  ;;  %v887_v20 = vadd.f32 %v1705_v49, %v886_v18 }
 0x2dc   : > { %1632 = vmatmul.msk.f32.gmra.mxu2 %vm377_vm1, %v1782_v19  ;;  %1645 = vmatmul.msk.f32.gmra.mxu0 %vm377_vm1, %v1782_v19 }
 0x2dd   : > { %1783 = vtanh.f32 %v887_v20 }
 0x2e2   : > { %v889_v21 = vpop.f32.mrf.mxu1 }
 0x2e3   : > { %v1784_v22 = vpop.eup %1783  ;;  %v890_v23 = vadd.f32 %v1705_v49, %v889_v21 }
 0x2e4   : > { %1633 = vmatmul.msk.f32.gmra.mxu2 %vm377_vm1, %v1784_v22  ;;  %1646 = vmatmul.msk.f32.gmra.mxu0 %vm377_vm1, %v1784_v22 }
 0x2e5   : > { %1785 = vtanh.f32 %v890_v23 }
 0x2ea   : > { %v892_v25 = vpop.f32.mrf.mxu1 }
 0x2eb   : > { %v1786_v26 = vpop.eup %1785  ;;  %v893_v27 = vadd.f32 %v1705_v49, %v892_v25 }
 0x2ec   : > { %1634 = vmatmul.msk.f32.gmra.mxu2 %vm377_vm1, %v1786_v26  ;;  %1647 = vmatmul.msk.f32.gmra.mxu0 %vm377_vm1, %v1786_v26 }
 0x2ed   : > { %1787 = vtanh.f32 %v893_v27 }
 0x2f2   : > { %v895_v29 = vpop.f32.mrf.mxu1 }
 0x2f3   : > { %v1788_v4 = vpop.eup %1787  ;;  %v896_v30 = vadd.f32 %v1705_v49, %v895_v29 }
 0x2f4   : > { %1635 = vmatmul.msk.f32.gmra.mxu2 %vm377_vm1, %v1788_v4  ;;  %1648 = vmatmul.msk.f32.gmra.mxu0 %vm377_vm1, %v1788_v4 }
 0x2f5   : > { %1789 = vtanh.f32 %v896_v30 }
 0x2fb   : > { %v1790_v33 = vpop.eup %1789 }
 0x2fc   : > { %1636 = vmatmul.msk.f32.gmra.mxu2 %vm377_vm1, %v1790_v33  ;;  %1649 = vmatmul.msk.f32.gmra.mxu0 %vm377_vm1, %v1790_v33  ;;  %v1663_v33 = vld [vmem:[%s2607_s3 + $0x78] sm:$0xff] }
 0x2fd   : > { %1222 = vmatpush.msra.mxu1 %v1663_v33 }
 0x341   : > { %v1008_v34 = vpop.f32.mrf.mxu0 }
 0x342   : > { %v1009_v53 = vadd.f32 %v2253_v45, %v1008_v34 }
 0x347   : > { %v957_v37 = vpop.f32.mrf.mxu2 }
 0x348   : > { %v958_v39 = vadd.f32 %v2246_v35, %v957_v37 }
 0x349   : > { %v1011_v44 = vpop.f32.mrf.mxu0 }
 0x34a   : > { %v1032_v40 = vmul.f32 1.442695, %v958_v39  ;;  %v1064_v41 = vsel %vm295_vm0, %v958_v39, 0.0  ;;  %v1012_v49 = vadd.f32 %v2253_v45, %v1011_v44 }
 0x34b   : > { %1065 = vadd.xlane.f32.xlu1 %v1064_v41 }
 0x34c   : > { %1791 = vpow2.f32 %v1032_v40 }
 0x34f   : > { %v960_v5 = vpop.f32.mrf.mxu2 }
 0x350   : > { %v961_v31 = vadd.f32 %v2246_v35, %v960_v5 }
 0x351   : > { %v1014_v6 = vpop.f32.mrf.mxu0 }
 0x352   : > { %v1792_v48 = vpop.eup %1791  ;;  %v1034_v50 = vmul.f32 1.442695, %v961_v31  ;;  %v1067_v51 = vsel %vm295_vm0, %v961_v31, 0.0  ;;  %v1015_v12 = vadd.f32 %v2253_v45, %v1014_v6 }
 0x353   : > { %v1048_v54 = vmul.f32 %v1792_v48, %v2123_v47  ;;  %1068 = vadd.xlane.f32.xlu2 %v1067_v51 }
 0x354   : > { %1793 = vpow2.f32 %v1034_v50 }
 0x355   : > { %v2259_v38 = vadd.f32 %v1048_v54, %v1009_v53 }
 0x357   : > { %v963_v57 = vpop.f32.mrf.mxu2  ;;  %1652 = vmatmul.msk.f32.vlgmr.msra.gmra.mxu3 %vm295_vm0, %v2259_v38 }
 0x358   : > { %v964_v59 = vadd.f32 %v2246_v35, %v963_v57 }
 0x359   : > { %v1017_v0 = vpop.f32.mrf.mxu0 }
 0x35a   : > { %v1794_v43 = vpop.eup %1793  ;;  %v1036_v7 = vmul.f32 1.442695, %v964_v59  ;;  %v1070_v61 = vsel %vm295_vm0, %v964_v59, 0.0  ;;  %v1018_v20 = vadd.f32 %v2253_v45, %v1017_v0  ;;  %v2350_v0 = vpop.xlane.xlu0 %525 }
 0x35b   : > { %1071 = vadd.xlane.f32.xlu0 %v1070_v61  ;;  %v1049_v47 = vmul.f32 %v1794_v43, %v2131_v58  ;;  %v1662_v43 = vld [vmem:[%s2607_s3 + $0x70] sm:$0xff]  ;;  %v1661_v61 = vld [vmem:[%s2607_s3 + $0x68] sm:$0xff] }
 0x35c   : > { %1795 = vpow2.f32 %v1036_v7  ;;  %1223 = vmatpush.msra.mxu1 %v1662_v43  ;;  %v1675_v7 = vld [vmem:[%s2609_s5 + $0x70] sm:$0xff] }
 0x35d   : > { %v2267_v8 = vadd.f32 %v1049_v47, %v1012_v49  ;;  %v2340_v49 = vpop.xlane.xlu2 %537  ;;  %v1674_v47 = vld [vmem:[%s2609_s5 + $0x68] sm:$0xff] }
 0x35e   : > { %1224 = vmatpush.msra.mxu1 %v1661_v61 }
 0x35f   : > { %v966_v62 = vpop.f32.mrf.mxu2  ;;  %1653 = vmatmul.msk.f32.gmra.mxu3 %vm295_vm0, %v2267_v8 }
 0x360   : > { %v967_v9 = vadd.f32 %v2246_v35, %v966_v62  ;;  %v1660_v62 = vld [vmem:[%s2607_s3 + $0x60] sm:$0xff] }
 0x361   : > { %v1020_v18 = vpop.f32.mrf.mxu0  ;;  %1225 = vmatpush.msra.mxu1 %v1660_v62 }
 0x362   : > { %v1796_v10 = vpop.eup %1795  ;;  %v1038_v11 = vmul.f32 1.442695, %v967_v9  ;;  %v1021_v27 = vadd.f32 %v2253_v45, %v1020_v18 }
 0x363   : > { %v1050_v13 = vmul.f32 %v1796_v10, %v2140_v63 }
 0x364   : > { %1797 = vpow2.f32 %v1038_v11  ;;  %1392 = vrot.lane.b32.xlu1 %v2267_v8, %s1848_s23  ;;  %v2356_v11 = vpop.xlane.xlu0 %528 }
 0x365   : > { %v2276_v58 = vadd.f32 %v1050_v13, %v1015_v12  ;;  %v2354_v10 = vpop.xlane.xlu2 %540  ;;  %v1673_v12 = vld [vmem:[%s2609_s5 + $0x60] sm:$0xff] }
 0x367   : > { %v969_v14 = vpop.f32.mrf.mxu2  ;;  %1654 = vmatmul.msk.f32.gmra.mxu3 %vm295_vm0, %v2276_v58 }
 0x368   : > { %v970_v16 = vadd.f32 %v2246_v35, %v969_v14 }
 0x369   : > { %v1023_v29 = vpop.f32.mrf.mxu0 }
 0x36a   : > { %v1798_v17 = vpop.eup %1797  ;;  %v1040_v19 = vmul.f32 1.442695, %v970_v16  ;;  %v1024_v39 = vadd.f32 %v2253_v45, %v1023_v29 }
 0x36b   : > { %1390 = vrot.lane.b32.xlu2 %v2259_v38, %s1848_s23  ;;  %v1051_v63 = vmul.f32 %v1798_v17, %v2149_v15 }
 0x36c   : > { %1799 = vpow2.f32 %v1040_v19 }
 0x36d   : > { %v2285_v21 = vadd.f32 %v1051_v63, %v1018_v20  ;;  %v2361_v13 = vpop.xlane.xlu2 %795 }
 0x36f   : > { %v972_v22 = vpop.f32.mrf.mxu2  ;;  %1394 = vrot.lane.b32.xlu0 %v2276_v58, %s1848_s23  ;;  %1655 = vmatmul.msk.f32.gmra.mxu3 %vm295_vm0, %v2285_v21 }
 0x370   : > { %v973_v23 = vadd.f32 %v2246_v35, %v972_v22 }
 0x371   : > { %v1026_v41 = vpop.f32.mrf.mxu0 }
 0x372   : > { %v1800_v25 = vpop.eup %1799  ;;  %v1042_v26 = vmul.f32 1.442695, %v973_v23  ;;  %v1027_v50 = vadd.f32 %v2253_v45, %v1026_v41 }
 0x373   : > { %v1052_v28 = vmul.f32 %v1800_v25, %v2161_v24 }
 0x374   : > { %1801 = vpow2.f32 %v1042_v26  ;;  %v2380_v26 = vld [vmem:[%s2606_s2 + $0x3] ss:$0 sm:$0xff] }
 0x375   : > { %v2294_v15 = vadd.f32 %v1052_v28, %v1021_v27  ;;  %v2367_v18 = vpop.permute.xlu2 %1366 }
 0x377   : > { %v975_v4 = vpop.f32.mrf.mxu2  ;;  %1656 = vmatmul.msk.f32.gmra.mxu3 %vm295_vm0, %v2294_v15 }
 0x378   : > { %v976_v30 = vadd.f32 %v2246_v35, %v975_v4 }
 0x37a   : > { %v1802_v34 = vpop.eup %1801  ;;  %v1044_v37 = vmul.f32 1.442695, %v976_v30  ;;  %v1082_v20 = vsel %vm295_vm0, %v976_v30, 0.0 }
 0x37b   : > { %v1053_v24 = vmul.f32 %v1802_v34, %v2168_v32  ;;  %v1029_v32 = vpop.f32.mrf.mxu0 }
 0x37c   : > { %1803 = vpow2.f32 %v1044_v37  ;;  %v1030_v6 = vadd.f32 %v2253_v45, %v1029_v32  ;;  %v1079_v45 = vsel %vm295_vm0, %v973_v23, 0.0 }
 0x37d   : > { %v2304_v40 = vadd.f32 %v1053_v24, %v1024_v39  ;;  %v805_v22 = vpop.xlane.xlu2 %804 }
 0x37f   : > { %v978_v44 = vpop.f32.mrf.mxu2  ;;  %1657 = vmatmul.msk.f32.gmra.mxu3 %vm295_vm0, %v2304_v40 }
 0x380   : > { %v979_v5 = vadd.f32 %v2246_v35, %v978_v44  ;;  %v1073_v35 = vsel %vm295_vm0, %v967_v9, 0.0  ;;  %v2352_v9 = vpop.xlane.xlu1 %531 }
 0x382   : > { %v1804_v31 = vpop.eup %1803  ;;  %v1046_v48 = vmul.f32 1.442695, %v979_v5  ;;  %v1085_v25 = vsel %vm295_vm0, %v979_v5, 0.0 }
 0x383   : > { %v1054_v51 = vmul.f32 %v1804_v31, %v2175_v42  ;;  %v1676_v42 = vld [vmem:[%s2609_s5 + $0x78] sm:$0xff] }
 0x384   : > { %1805 = vpow2.f32 %v1046_v48  ;;  %1273 = vmatpush.msra.mxu2 %v1676_v42 }
 0x385   : > { %v2311_v53 = vadd.f32 %v1054_v51, %v1027_v50  ;;  %v2384_v29 = vpop.permute.xlu2 %1372 }
 0x386   : > { %1274 = vmatpush.msra.mxu2 %v1675_v7 }
 0x387   : > { %1658 = vmatmul.msk.f32.gmra.mxu3 %vm295_vm0, %v2311_v53 }
 0x388   : > { %1275 = vmatpush.msra.mxu2 %v1674_v47  ;;  %v535_v14 = vpop.xlane.xlu1 %534 }
 0x389   : > { %v821_v62 = vadd.f32 %v805_v22, %v535_v14 }
 0x38a   : > { %v1806_v54 = vpop.eup %1805  ;;  %1276 = vmatpush.msra.mxu2 %v1673_v12 }
 0x38b   : > { %v1055_v57 = vmul.f32 %v1806_v54, %v2188_v52  ;;  %v1076_v52 = vsel %vm295_vm0, %v970_v16, 0.0  ;;  %v2363_v16 = vpop.xlane.xlu0 %543 }
 0x38d   : > { %v2318_v59 = vadd.f32 %v1055_v57, %v1030_v6  ;;  %v2387_v39 = vpop.xlane.xlu2 %813 }
 0x38e   : > { %1074 = vadd.xlane.f32.xlu1 %v1073_v35 }
 0x38f   : > { %1659 = vmatmul.msk.f32.gmra.mxu3 %vm295_vm0, %v2318_v59 }
 0x390   : > { %v2365_v17 = vpop.xlane.xlu1 %546 }
 0x393   : > { %v2369_v19 = vpop.xlane.xlu0 %798 }
 0x394   : > { %1077 = vadd.xlane.f32.xlu2 %v1076_v52 }
 0x395   : > { %v2403_v51 = vpop.permute.xlu2 %1376 }
 0x398   : > { %v2372_v63 = vpop.xlane.xlu1 %801 }
 0x399   : > { %1080 = vadd.xlane.f32.xlu0 %v1079_v45 }
 0x39b   : > { %v2374_v23 = vpop.permute.xlu0 %1368 }
 0x3a0   : > { %v2382_v27 = vpop.permute.xlu1 %1370 }
 0x3a3   : > { %v808_v30 = vpop.xlane.xlu0 %807 }
 0x3a7   : > { %1398 = vrot.lane.b32.xlu1 %v2294_v15, %s1848_s23 }
 0x3a8   : > { %v811_v33 = vpop.xlane.xlu1 %810 }
 0x3ab   : > { %v2390_v41 = vpop.permute.xlu0 %1374 }
 0x3ac   : > { %1396 = vrot.lane.b32.xlu2 %v2285_v21, %s1848_s23 }
 0x3ad   : > { %1400 = vrot.lane.b32.xlu0 %v2304_v40, %s1848_s23 }
 0x3b0   : > { %v2394_v44 = vpop.permute.xlu1 %1378 }
 0x3b3   : > { %v2399_v50 = vpop.xlane.xlu0 %816 }
 0x3bb   : > { %v2410_v35 = vpop.permute.xlu0 %1380 }
 0x3be   : > { %v2407_v32 = vpop.xlane.xlu1 %1065 }
 0x3c6   : > { %v2414_v42 = vpop.xlane.xlu2 %1068 }
 0x3ce   : > { %v2419_v61 = vpop.xlane.xlu0 %1071  ;;  %v2423_v47 = vpop.permute.xlu2 %1390 }
 0x3d1   : > { %1083 = vadd.xlane.f32.xlu1 %v1082_v20 }
 0x3d5   : > { %1086 = vadd.xlane.f32.xlu2 %v1085_v25 }
 0x3d6   : > { %v2416_v43 = vpop.permute.xlu1 %1392 }
 0x3da   : > { %v1144_v28 = vpop.f32.mrf.mxu3 }
 0x3db   : > { %v1145_v4 = vadd.f32 %v2380_v26, %v1144_v28 }
 0x3dd   : > { %1807 = vtanh.f32 %v1145_v4 }
 0x3e2   : > { %v1147_v34 = vpop.f32.mrf.mxu3 }
 0x3e3   : > { %v1808_v37 = vpop.eup %1807  ;;  %v1148_v24 = vadd.f32 %v2380_v26, %v1147_v34  ;;  %v2428_v34 = vpop.permute.xlu0 %1394 }
 0x3e4   : > { %1665 = vmatmul.msk.f32.vlgmr.msra.gmra.mxu1 %vm377_vm1, %v1808_v37  ;;  %1678 = vmatmul.msk.f32.vlgmr.msra.gmra.mxu2 %vm377_vm1, %v1808_v37  ;;  %v822_v37 = vadd.f32 %v808_v30, %v2340_v49  ;;  %v1449_v49 = vsel %vm295_vm0, %v2026_v3, %v2384_v29 }
 0x3e5   : > { %1809 = vtanh.f32 %v1148_v24 }
 0x3ea   : > { %1404 = vrot.lane.b32.xlu1 %v2318_v59, %s1848_s23  ;;  %v1150_v5 = vpop.f32.mrf.mxu3 }
 0x3eb   : > { %v1810_v31 = vpop.eup %1809  ;;  %v1151_v48 = vadd.f32 %v2380_v26, %v1150_v5 }
 0x3ec   : > { %1666 = vmatmul.msk.f32.gmra.mxu1 %vm377_vm1, %v1810_v31  ;;  %1679 = vmatmul.msk.f32.gmra.mxu2 %vm377_vm1, %v1810_v31  ;;  %v823_v31 = vadd.f32 %v811_v33, %v2354_v10 }
 0x3ed   : > { %1811 = vtanh.f32 %v1151_v48  ;;  %1402 = vrot.lane.b32.xlu2 %v2311_v53, %s1848_s23 }
 0x3f2   : > { %v1153_v54 = vpop.f32.mrf.mxu3 }
 0x3f3   : > { %v1812_v6 = vpop.eup %1811  ;;  %v1154_v57 = vadd.f32 %v2380_v26, %v1153_v54 }
 0x3f4   : > { %1667 = vmatmul.msk.f32.gmra.mxu1 %vm377_vm1, %v1812_v6  ;;  %1680 = vmatmul.msk.f32.gmra.mxu2 %vm377_vm1, %v1812_v6 }
 0x3f5   : > { %1813 = vtanh.f32 %v1154_v57 }
 0x3fa   : > { %v1156_v52 = vpop.f32.mrf.mxu3 }
 0x3fb   : > { %v1814_v45 = vpop.eup %1813  ;;  %v1157_v7 = vadd.f32 %v2380_v26, %v1156_v52 }
 0x3fc   : > { %1668 = vmatmul.msk.f32.gmra.mxu1 %vm377_vm1, %v1814_v45  ;;  %1681 = vmatmul.msk.f32.gmra.mxu2 %vm377_vm1, %v1814_v45  ;;  %v1450_v45 = vsel %vm295_vm0, %v2046_v36, %v2390_v41  ;;  %v2469_v41 = vld [vmem:[%s2608_s4 + $0x3] ss:$0 sm:$0xff] }
 0x3fd   : > { %1815 = vtanh.f32 %v1157_v7 }
 0x401   : > { %v1075_v12 = vpop.xlane.xlu1 %1074 }
 0x402   : > { %v2425_v20 = vadd.f32 %v1075_v12, %v821_v62  ;;  %v1159_v25 = vpop.f32.mrf.mxu3 }
 0x403   : > { %v1816_v28 = vpop.eup %1815  ;;  %v1160_v4 = vadd.f32 %v2380_v26, %v1159_v25  ;;  %v825_v25 = vadd.f32 %v2399_v50, %v2365_v17 }
 0x404   : > { %1669 = vmatmul.msk.f32.gmra.mxu1 %vm377_vm1, %v1816_v28  ;;  %1682 = vmatmul.msk.f32.gmra.mxu2 %vm377_vm1, %v1816_v28 }
 0x405   : > { %1817 = vtanh.f32 %v1160_v4 }
 0x407   : > { %v1078_v24 = vpop.xlane.xlu2 %1077 }
 0x408   : > { %v2433_v5 = vadd.f32 %v1078_v24, %v822_v37 }
 0x40a   : > { %v1162_v14 = vpop.f32.mrf.mxu3 }
 0x40b   : > { %v1818_v22 = vpop.eup %1817  ;;  %v1163_v48 = vadd.f32 %v2380_v26, %v1162_v14 }
 0x40c   : > { %v1081_v54 = vpop.xlane.xlu0 %1080  ;;  %1670 = vmatmul.msk.f32.gmra.mxu1 %vm377_vm1, %v1818_v22  ;;  %1683 = vmatmul.msk.f32.gmra.mxu2 %vm377_vm1, %v1818_v22 }
 0x40d   : > { %1819 = vtanh.f32 %v1163_v48  ;;  %v2439_v6 = vadd.f32 %v1081_v54, %v823_v31  ;;  %v2478_v48 = vld [vmem:[%s2610_s6 + $0x3] ss:$0 sm:$0xff] }
 0x40f   : > { %v1397_v30 = vpop.permute.xlu2 %1396 }
 0x410   : > { %v2445_v57 = vsel %vm1454_vm2, %v1449_v49, %v1397_v30 }
 0x412   : > { %v1165_v10 = vpop.f32.mrf.mxu3 }
 0x413   : > { %v1820_v33 = vpop.eup %1819  ;;  %v1166_v52 = vadd.f32 %v2380_v26, %v1165_v10  ;;  %v824_v26 = vadd.f32 %v2387_v39, %v2363_v16 }
 0x414   : > { %1671 = vmatmul.msk.f32.gmra.mxu1 %vm377_vm1, %v1820_v33  ;;  %1684 = vmatmul.msk.f32.gmra.mxu2 %vm377_vm1, %v1820_v33 }
 0x415   : > { %1821 = vtanh.f32 %v1166_v52 }
 0x419   : > { %v1399_v7 = vpop.permute.xlu1 %1398 }
 0x41a   : > { %v2454_v3 = vsel %vm1454_vm2, %v1450_v45, %v1399_v7 }
 0x41b   : > { %v1822_v29 = vpop.eup %1821 }
 0x41c   : > { %1672 = vmatmul.msk.f32.gmra.mxu1 %vm377_vm1, %v1822_v29  ;;  %1685 = vmatmul.msk.f32.gmra.mxu2 %vm377_vm1, %v1822_v29 }
 0x444   : > { %v1084_v62 = vpop.xlane.xlu1 %1083 }
 0x445   : > { %v2460_v12 = vadd.f32 %v1084_v62, %v824_v26 }
 0x448   : > { %v1087_v28 = vpop.xlane.xlu2 %1086 }
 0x449   : > { %v2464_v36 = vadd.f32 %v1087_v28, %v825_v25 }
 0x461   : > { %v1227_v4 = vpop.f32.mrf.mxu1 }
 0x462   : > { %v1228_v37 = vadd.f32 %v2469_v41, %v1227_v4 }
 0x464   : > { %v1334_v24 = vsel %vm295_vm0, %v1228_v37, 0.0  ;;  %v1302_v16 = vmul.f32 1.442695, %v1228_v37 }
 0x465   : > { %1335 = vadd.xlane.f32.xlu0 %v1334_v24 }
 0x466   : > { %1823 = vpow2.f32 %v1302_v16 }
 0x467   : > { %v1278_v39 = vpop.f32.mrf.mxu2 }
 0x468   : > { %v1279_v52 = vadd.f32 %v2478_v48, %v1278_v39 }
 0x469   : > { %v1230_v14 = vpop.f32.mrf.mxu1 }
 0x46a   : > { %v1231_v17 = vadd.f32 %v2469_v41, %v1230_v14 }
 0x46c   : > { %v1337_v50 = vsel %vm295_vm0, %v1231_v17, 0.0  ;;  %v1824_v31 = vpop.eup %1823  ;;  %v1304_v26 = vmul.f32 1.442695, %v1231_v17 }
 0x46d   : > { %1338 = vadd.xlane.f32.xlu1 %v1337_v50  ;;  %v1318_v30 = vmul.f32 %v1824_v31, %v2259_v38 }
 0x46f   : > { %v1281_v22 = vpop.f32.mrf.mxu2  ;;  %v1326_v45 = vadd.f32 %v1318_v30, %v1279_v52 }
 0x470   : > { %v1282_v17 = vadd.f32 %v2478_v48, %v1281_v22 }
 0x471   : > { %v1233_v54 = vpop.f32.mrf.mxu1 }
 0x472   : > { %v1234_v49 = vadd.f32 %v2469_v41, %v1233_v54 }
 0x474   : > { %v1306_v10 = vmul.f32 1.442695, %v1234_v49  ;;  %v1340_v33 = vsel %vm295_vm0, %v1234_v49, 0.0 }
 0x475   : > { %1341 = vadd.xlane.f32.xlu2 %v1340_v33 }
 0x476   : > { %1825 = vpow2.f32 %v1306_v10 }
 0x477   : > { %v1284_v7 = vpop.f32.mrf.mxu2  ;;  %1827 = vpow2.f32 %v1304_v26 }
 0x478   : > { %v1285_v4 = vadd.f32 %v2478_v48, %v1284_v7 }
 0x479   : > { %v1236_v29 = vpop.f32.mrf.mxu1  ;;  %1422 = vrot.lane.b32.xlu0 %v1326_v45, %s1849_s27 }
 0x47c   : > { %v1826_v62 = vpop.eup %1825 }
 0x47d   : > { %v1320_v28 = vmul.f32 %v1826_v62, %v2276_v58  ;;  %v1828_v24 = vpop.eup %1827 }
 0x47e   : > { %v1319_v14 = vmul.f32 %v1828_v24, %v2267_v8 }
 0x47f   : > { %v1287_v25 = vpop.f32.mrf.mxu2  ;;  %v1328_v16 = vadd.f32 %v1320_v28, %v1285_v4 }
 0x480   : > { %v1327_v58 = vadd.f32 %v1319_v14, %v1282_v17  ;;  %v1237_v17 = vadd.f32 %v2469_v41, %v1236_v29 }
 0x481   : > { %v1239_v38 = vpop.f32.mrf.mxu1 }
 0x482   : > { %v1240_v37 = vadd.f32 %v2469_v41, %v1239_v38 }
 0x484   : > { %v1310_v39 = vmul.f32 1.442695, %v1240_v37 }
 0x486   : > { %1829 = vpow2.f32 %v1310_v39  ;;  %1426 = vrot.lane.b32.xlu1 %v1328_v16, %s1849_s27 }
 0x487   : > { %v1290_v50 = vpop.f32.mrf.mxu2 }
 0x488   : > { %v1291_v10 = vadd.f32 %v2478_v48, %v1290_v50 }
 0x489   : > { %v1242_v31 = vpop.f32.mrf.mxu1 }
 0x48a   : > { %v1243_v54 = vadd.f32 %v2469_v41, %v1242_v31 }
 0x48c   : > { %v1830_v49 = vpop.eup %1829  ;;  %v1312_v30 = vmul.f32 1.442695, %v1243_v54 }
 0x48d   : > { %v1322_v33 = vmul.f32 %v1830_v49, %v2294_v15  ;;  %1424 = vrot.lane.b32.xlu2 %v1327_v58, %s1849_s27  ;;  %v1343_v49 = vsel %vm295_vm0, %v1237_v17, 0.0 }
 0x48e   : > { %1831 = vpow2.f32 %v1312_v30  ;;  %v1308_v30 = vmul.f32 1.442695, %v1237_v17 }
 0x48f   : > { %v1330_v52 = vadd.f32 %v1322_v33, %v1291_v10  ;;  %v1293_v45 = vpop.f32.mrf.mxu2 }
 0x490   : > { %v1294_v62 = vadd.f32 %v2478_v48, %v1293_v45 }
 0x491   : > { %v1245_v7 = vpop.f32.mrf.mxu1 }
 0x492   : > { %v1246_v8 = vadd.f32 %v2469_v41, %v1245_v7 }
 0x494   : > { %v1832_v26 = vpop.eup %1831  ;;  %v1314_v22 = vmul.f32 1.442695, %v1246_v8 }
 0x495   : > { %v1323_v28 = vmul.f32 %v1832_v26, %v2304_v40  ;;  %v1346_v26 = vsel %vm295_vm0, %v1240_v37, 0.0  ;;  %v1405_v37 = vpop.permute.xlu1 %1404 }
 0x496   : > { %1833 = vpow2.f32 %v1314_v22  ;;  %v1349_v22 = vsel %vm295_vm0, %v1243_v54, 0.0  ;;  %v818_v54 = vadd.f32 %v2361_v13, %v2350_v0 }
 0x497   : > { %v1331_v38 = vadd.f32 %v1323_v28, %v1294_v62  ;;  %v1296_v4 = vpop.f32.mrf.mxu2 }
 0x498   : > { %v1297_v14 = vadd.f32 %v2478_v48, %v1296_v4  ;;  %v1088_v4 = vadd.f32 %v2407_v32, %v818_v54  ;;  %v819_v32 = vadd.f32 %v2369_v19, %v2356_v11 }
 0x499   : > { %v1248_v24 = vpop.f32.mrf.mxu1 }
 0x49a   : > { %v1249_v15 = vadd.f32 %v2469_v41, %v1248_v24  ;;  %v1288_v41 = vadd.f32 %v2478_v48, %v1287_v25  ;;  %v1089_v24 = vadd.f32 %v2414_v42, %v819_v32  ;;  %v820_v42 = vadd.f32 %v2372_v63, %v2352_v9 }
 0x49c   : > { %v1834_v16 = vpop.eup %1833  ;;  %v1316_v39 = vmul.f32 1.442695, %v1249_v15  ;;  %v1355_v62 = vsel %vm295_vm0, %v1249_v15, 0.0 }
 0x49d   : > { %v1324_v50 = vmul.f32 %v1834_v16, %v2311_v53 }
 0x49e   : > { %1835 = vpow2.f32 %v1316_v39 }
 0x49f   : > { %v1332_v31 = vadd.f32 %v1324_v50, %v1297_v14  ;;  %v1299_v58 = vpop.f32.mrf.mxu2  ;;  %1837 = vpow2.f32 %v1308_v30 }
 0x4a0   : > { %v1300_v10 = vadd.f32 %v2478_v48, %v1299_v58  ;;  %v1352_v48 = vsel %vm295_vm0, %v1246_v8, 0.0 }
 0x4a3   : > { %1344 = vadd.xlane.f32.xlu0 %v1343_v49 }
 0x4a4   : > { %v1836_v40 = vpop.eup %1835 }
 0x4a5   : > { %v1325_v33 = vmul.f32 %v1836_v40, %v2318_v59  ;;  %v1838_v7 = vpop.eup %1837  ;;  %v1401_v59 = vpop.permute.xlu0 %1400 }
 0x4a6   : > { %v1321_v53 = vmul.f32 %v1838_v7, %v2285_v21  ;;  %v2514_v21 = vpop.permute.xlu2 %1402 }
 0x4a7   : > { %v1333_v45 = vadd.f32 %v1325_v33, %v1300_v10 }
 0x4a8   : > { %v1329_v29 = vadd.f32 %v1321_v53, %v1288_v41 }
 0x4b0   : > { %1347 = vadd.xlane.f32.xlu1 %v1346_v26 }
 0x4b6   : > { %1350 = vadd.xlane.f32.xlu2 %v1349_v22  ;;  %v1452_v22 = vsel %vm295_vm0, %v2062_v55, %v2394_v44 }
 0x4b7   : > { %1428 = vrot.lane.b32.xlu0 %v1329_v29, %s1849_s27 }
 0x4b8   : > { %1356 = vadd.xlane.f32.xlu1 %v1355_v62  ;;  %v1461_v62 = vsel %vm1454_vm2, %v1452_v22, %v2514_v21 }
 0x4ce   : > { %1430 = vrot.lane.b32.xlu2 %v1330_v52, %s1849_s27  ;;  %v1446_v52 = vsel %vm295_vm0, %v2002_v56, %v2367_v18 }
 0x4cf   : > { %v1455_v8 = vsel %vm1454_vm2, %v1446_v52, %v2423_v47  ;;  %v1447_v47 = vsel %vm295_vm0, %v2010_v1, %v2374_v23  ;;  %v1090_v1 = vadd.f32 %v2419_v61, %v820_v42  ;;  %v1448_v23 = vsel %vm295_vm0, %v2018_v2, %v2382_v27 }
 0x4d0   : > { %v1456_v15 = vsel %vm1454_vm2, %v1447_v47, %v2416_v43  ;;  %v1457_v43 = vsel %vm1454_vm2, %v1448_v23, %v2428_v34 }
 0x4d1   : > { %1432 = vrot.lane.b32.xlu1 %v1331_v38, %s1849_s27 }
 0x4d6   : > { %1436 = vrot.lane.b32.xlu2 %v1333_v45, %s1849_s27 }
 0x4d8   : > { %v1336_v25 = vpop.xlane.xlu0 %1335 }
 0x4d9   : > { %v1358_v0 = vadd.f32 %v1336_v25, %v1088_v4 }
 0x4e0   : > { %v1339_v56 = vpop.xlane.xlu1 %1338 }
 0x4e1   : > { %1353 = vadd.xlane.f32.xlu0 %v1352_v48  ;;  %v1359_v16 = vadd.f32 %v1339_v56, %v1089_v24 }
 0x4e8   : > { %v1342_v28 = vpop.xlane.xlu2 %1341 }
 0x4e9   : > { %v1360_v14 = vadd.f32 %v1342_v28, %v1090_v1 }
 0x4eb   : > { %v1423_v13 = vpop.permute.xlu0 %1422 }
 0x4ec   : > { %v1464_v38 = vsel %vm1463_vm3, %v1455_v8, %v1423_v13 }
 0x4ed   : > { %v1472_v18 = vsel %vm377_vm1, %v1464_v38, %v1358_v0 }
 0x4ee   : > { %1481 = vst.msk [vmem:[%s2528_s9] sm:$0xff] %vm1480_vm4, %v1472_v18 }
 0x4f0   : > { %v1425_v39 = vpop.permute.xlu2 %1424 }
 0x4f1   : > { %v1465_v11 = vsel %vm1463_vm3, %v1456_v15, %v1425_v39 }
 0x4f2   : > { %v1473_v19 = vsel %vm377_vm1, %v1465_v11, %v1359_v16 }
 0x4f3   : > { %1482 = vst.msk [vmem:[%s2528_s9 + $0x8] sm:$0xff] %vm1480_vm4, %v1473_v19 }
 0x4f5   : > { %1434 = vrot.lane.b32.xlu0 %v1332_v31, %s1849_s27 }
 0x4f8   : > { %v1427_v50 = vpop.permute.xlu1 %1426 }
 0x4f9   : > { %v1466_v17 = vsel %vm1463_vm3, %v1457_v43, %v1427_v50 }
 0x4fa   : > { %v1474_v58 = vsel %vm377_vm1, %v1466_v17, %v1360_v14 }
 0x4fb   : > { %1483 = vst.msk [vmem:[%s2528_s9 + $0x10] sm:$0xff] %vm1480_vm4, %v1474_v58 }
 0x516   : > { %v1345_v9 = vpop.xlane.xlu0 %1344 }
 0x517   : > { %v1361_v63 = vadd.f32 %v1345_v9, %v2425_v20 }
 0x523   : > { %v1348_v34 = vpop.xlane.xlu1 %1347 }
 0x524   : > { %v1362_v49 = vadd.f32 %v1348_v34, %v2433_v5 }
 0x529   : > { %v1351_v61 = vpop.xlane.xlu2 %1350  ;;  %v1429_v31 = vpop.permute.xlu0 %1428 }
 0x52a   : > { %v1467_v2 = vsel %vm1463_vm3, %v2445_v57, %v1429_v31  ;;  %v1453_v57 = vsel %vm295_vm0, %v2068_v60, %v2410_v35  ;;  %v1363_v60 = vadd.f32 %v1351_v61, %v2439_v6 }
 0x52b   : > { %v1475_v27 = vsel %vm377_vm1, %v1467_v2, %v1361_v63  ;;  %v1357_v20 = vpop.xlane.xlu1 %1356  ;;  %v1462_v33 = vsel %vm1454_vm2, %v1453_v57, %v1405_v37 }
 0x52c   : > { %1484 = vst.msk [vmem:[%s2528_s9 + $0x18] sm:$0xff] %vm1480_vm4, %v1475_v27  ;;  %v1365_v45 = vadd.f32 %v1357_v20, %v2464_v36 }
 0x531   : > { %v1431_v40 = vpop.permute.xlu2 %1430 }
 0x532   : > { %v1468_v30 = vsel %vm1463_vm3, %v2454_v3, %v1431_v40  ;;  %v1451_v3 = vsel %vm295_vm0, %v2055_v46, %v2403_v51 }
 0x533   : > { %v1476_v10 = vsel %vm377_vm1, %v1468_v30, %v1362_v49  ;;  %v1460_v53 = vsel %vm1454_vm2, %v1451_v3, %v1401_v59 }
 0x534   : > { %1485 = vst.msk [vmem:[%s2528_s9 + $0x20] sm:$0xff] %vm1480_vm4, %v1476_v10 }
 0x539   : > { %v1437_v7 = vpop.permute.xlu2 %1436 }
 0x53a   : > { %v1471_v5 = vsel %vm1463_vm3, %v1462_v33, %v1437_v7 }
 0x53b   : > { %v1479_v26 = vsel %vm377_vm1, %v1471_v5, %v1365_v45 }
 0x53c   : > { %1488 = vst.msk [vmem:[%s2528_s9 + $0x38] sm:$0xff] %vm1480_vm4, %v1479_v26 }
 0x543   : > { %v1433_v35 = vpop.permute.xlu1 %1432 }
 0x544   : > { %v1469_v41 = vsel %vm1463_vm3, %v1460_v53, %v1433_v35 }
 0x545   : > { %v1477_v36 = vsel %vm377_vm1, %v1469_v41, %v1363_v60 }
 0x546   : > { %1486 = vst.msk [vmem:[%s2528_s9 + $0x28] sm:$0xff] %vm1480_vm4, %v1477_v36 }
 0x554   : > { %v1354_v29 = vpop.xlane.xlu0 %1353 }
 0x555   : > { %v1364_v46 = vadd.f32 %v1354_v29, %v2460_v12 }
 0x567   : > { %v1435_v51 = vpop.permute.xlu0 %1434 }
 0x568   : > { %v1470_v6 = vsel %vm1463_vm3, %v1461_v62, %v1435_v51 }
 0x569   : > { %v1478_v59 = vsel %vm377_vm1, %v1470_v6, %v1364_v46 }
 0x56a   : > { %1487 = vst.msk [vmem:[%s2528_s9 + $0x30] sm:$0xff] %vm1480_vm4, %v1478_v59 }
 0x56b PF: > { %s17_s24 = sadd.s32 1, %s1845_s24  }
 0x56c   : > { %p14_p4 = scmp.ge.s32.totalorder %s17_s24, 4  }
 0x56e   :  { %16 = sbr.rel (!%p14_p4) target bundleno = 1 (0x1), region = 96 }

</bundles_post_ra>
